<compile_context>
chip_gen: v6e
topology: v6e:2x2x1
jax: 0.10.0
libtpu: 0.0.40
codegen_flags: <defaults>
</compile_context>

<pallas_src>
import jax
import jax.numpy as jnp
from jax.experimental import pallas as pl
from jax.experimental.pallas import tpu as pltpu

HIDDEN = 256


def _mlp_kernel(x_ref, w1_ref, b1_ref, w2_ref, b2_ref, w3_ref, b3_ref, o_ref):
    # Layer 1: Linear(F, 256) + ReLU on the MXU.  x is cast to the MXU operand
    # dtype (bf16 by default) in-kernel; accumulation stays f32.
    x = x_ref[...].astype(w1_ref.dtype)
    h = jnp.dot(x, w1_ref[...], preferred_element_type=jnp.float32)
    h = jnp.maximum(h + b1_ref[...], 0.0)
    # Layer 2: Linear(256, 256) + ReLU on the MXU.
    h = jnp.dot(h.astype(w2_ref.dtype), w2_ref[...],
                preferred_element_type=jnp.float32)
    h = jnp.maximum(h + b2_ref[...], 0.0)
    # Layer 3: Linear(256, 1) as a lane-dense VPU multiply + cross-lane reduce
    # (w3 passed pre-transposed as a (1, 256) f32 row).  The MXU is the loaded
    # unit for layers 1-2, so this VPU/XLU work rides in free slots.
    s = jnp.sum(h * w3_ref[...], axis=-1)                        # (block_b,)
    o_ref[...] = (s + b3_ref[0]).astype(o_ref.dtype)[None, :]    # (1, block_b)


def _vmem_plan(batch, feature_dim, w_itemsize, block_b=None):
    """Pick the batch tile and a VMEM limit.

    Budget counts the double-buffered f32 x tile, the in-kernel bf16 copy of
    it, the f32 hidden intermediates, the output tile and the resident weight
    blocks (counted at 2 buffers even though we request Buffered(1)), with
    headroom for Mosaic internal scratch and semaphores.
    """
    try:
        vmem_cap = int(pltpu.get_tpu_info().vmem_capacity_bytes)
    except Exception:
        vmem_cap = 64 * 1024 * 1024   # v7x-conservative fallback
    budget = vmem_cap - 16 * 1024 * 1024

    weight_bytes = (2 * (feature_dim * HIDDEN + HIDDEN * HIDDEN) * w_itemsize
                    + 2 * (3 * HIDDEN + 8) * 4)                 # biases + w3 row

    def tile_bytes(bb):
        return (2 * bb * feature_dim * 4      # double-buffered f32 x tile
                + bb * feature_dim * 2        # in-kernel bf16 copy of the x tile
                + 2 * bb * HIDDEN * 4         # f32 hidden activations (2 live)
                + 2 * bb * 4)                 # double-buffered (1, bb) out tile

    if block_b is None:
        if batch <= 128:
            block_b = batch
        else:
            block_b = 128
            # Prefer >= 2 steps per TensorCore (v7x megacore: 4 total), then
            # >= 2 total, then a single step; largest tile meeting the target.
            for steps_target in (4, 2, 1):
                found = None
                for cand in (2048, 1024, 512, 256, 128):
                    if cand > batch or pl.cdiv(batch, cand) < steps_target:
                        continue
                    if weight_bytes + tile_bytes(cand) <= budget:
                        found = cand
                        break
                if found is not None:
                    block_b = found
                    break

    vmem_limit = weight_bytes + tile_bytes(block_b) + 16 * 1024 * 1024
    vmem_limit = int(min(max(vmem_limit, 32 * 1024 * 1024), vmem_cap))
    return block_b, vmem_limit


def _build_call(*, B, F, block_b, vmem_limit, flops, bytes_accessed,
                single_buffer_weights):
    def resident(shape):
        kwargs = {}
        if single_buffer_weights:
            kwargs["pipeline_mode"] = pl.Buffered(1)
        return pl.BlockSpec(shape, lambda i: (0, 0), **kwargs)

    grid = (pl.cdiv(B, block_b),)
    return pl.pallas_call(
        _mlp_kernel,
        out_shape=jax.ShapeDtypeStruct((1, B), jnp.float32),
        grid_spec=pltpu.PrefetchScalarGridSpec(
            num_scalar_prefetch=0,
            grid=grid,
            in_specs=[
                pl.BlockSpec((block_b, F), lambda i: (i, 0)),       # x tile (f32)
                resident((F, HIDDEN)),                              # w1 (resident)
                resident((1, HIDDEN)),                              # b1
                resident((HIDDEN, HIDDEN)),                         # w2
                resident((1, HIDDEN)),                              # b2
                resident((1, HIDDEN)),                              # w3 as f32 row
                pl.BlockSpec(memory_space=pltpu.MemorySpace.SMEM),  # b3 scalar
            ],
            # Lane-dense output: each grid step writes a (1, block_b) column
            # slab of a (1, B) array (unmasked vst), reshaped to (B, 1) below.
            out_specs=pl.BlockSpec((1, block_b), lambda i: (0, i)),
        ),
        compiler_params=pltpu.CompilerParams(
            dimension_semantics=("parallel",),
            vmem_limit_bytes=vmem_limit,
        ),
        cost_estimate=pl.CostEstimate(
            flops=flops, transcendentals=0, bytes_accessed=bytes_accessed),
    )


def predictor_forward(state, params, *, block_b=None,
                      compute_dtype=jnp.bfloat16):
    """state: (B, F); params: dict with w1,b1,w2,b2,w3,b3.

    Weight layout (vs PyTorch): w* are (in_features, out_features); b1/b2 are
    (1, 256); w3 is (256, 1); b3 is (1, 1).  Returns (B, 1) float32.
    Layers 1-2 run on the MXU with `compute_dtype` operands (bf16 by default
    for v5e/v6e/v7x matmul throughput); bias/ReLU/layer-3 math and all matmul
    accumulation stay f32.
    """
    B, F = state.shape
    w_itemsize = jnp.dtype(compute_dtype).itemsize
    block_b, vmem_limit = _vmem_plan(B, F, w_itemsize, block_b)

    # Tiny, one-time weight casts in the wrapper; x is NOT touched here (its
    # cast happens in-kernel so there is no extra HBM pass over it).
    x = state
    w1 = params["w1"].astype(compute_dtype)
    w2 = params["w2"].astype(compute_dtype)
    b1 = params["b1"].reshape(1, HIDDEN).astype(jnp.float32)
    b2 = params["b2"].reshape(1, HIDDEN).astype(jnp.float32)
    w3_row = params["w3"].reshape(1, HIDDEN).astype(jnp.float32)   # (1, 256)
    b3 = params["b3"].reshape(1).astype(jnp.float32)               # SMEM scalar

    flops = 2 * B * (F * HIDDEN + HIDDEN * HIDDEN + HIDDEN)
    bytes_accessed = (
        B * F * jnp.dtype(state.dtype).itemsize                    # x
        + B * 4                                                    # out
        + (F * HIDDEN + HIDDEN * HIDDEN) * w_itemsize              # w1, w2
        + (3 * HIDDEN + 1) * 4)                                    # biases + w3

    args = (x, w1, b1, w2, b2, w3_row, b3)
    try:
        out = _build_call(B=B, F=F, block_b=block_b, vmem_limit=vmem_limit,
                          flops=flops, bytes_accessed=bytes_accessed,
                          single_buffer_weights=True)(*args)
    except Exception:
        # Fallback: if this Pallas build rejects pl.Buffered(1) on the resident
        # weight blocks, rebuild with default double-buffering (the VMEM budget
        # above already accounts for two weight buffers).
        out = _build_call(B=B, F=F, block_b=block_b, vmem_limit=vmem_limit,
                          flops=flops, bytes_accessed=bytes_accessed,
                          single_buffer_weights=False)(*args)
    return out.reshape(B, 1)


def init_predictor_params(key, feature_dim):
    """Deterministic init mirroring nn.Linear's default U(-1/sqrt(in), 1/sqrt(in))."""
    ks = jax.random.split(key, 6)

    def linear(kw, kb, fan_in, fan_out):
        bound = 1.0 / jnp.sqrt(jnp.float32(fan_in))
        w = jax.random.uniform(kw, (fan_in, fan_out), jnp.float32, -bound, bound)
        b = jax.random.uniform(kb, (1, fan_out), jnp.float32, -bound, bound)
        return w, b

    w1, b1 = linear(ks[0], ks[1], feature_dim, HIDDEN)
    w2, b2 = linear(ks[2], ks[3], HIDDEN, HIDDEN)
    w3, b3 = linear(ks[4], ks[5], HIDDEN, 1)
    return {"w1": w1, "b1": b1, "w2": w2, "b2": b2, "w3": w3, "b3": b3}


def predictor_reference(state, p):
    h = jnp.maximum(state @ p["w1"] + p["b1"], 0.0)
    h = jnp.maximum(h @ p["w2"] + p["b2"], 0.0)
    # The kernel's layer 3 is an exact f32 VPU reduction, so compare that layer
    # against a high-precision reference dot.
    return jnp.dot(h, p["w3"], precision=jax.lax.Precision.HIGHEST) + p["b3"]


if __name__ == "__main__":
    key = jax.random.PRNGKey(0)
    k_params, k_state = jax.random.split(key)

    batch = 256        # exercises a 2-step 'parallel' grid (block_b=128)
    feature_dim = 32   # lane-padded inside the kernel by Mosaic, not the wrapper

    params = init_predictor_params(k_params, feature_dim)
    state = jax.random.normal(k_state, (batch, feature_dim), jnp.float32)

    ref = predictor_reference(state, params)

    # Exact f32 MXU path: tight correctness gate.
    out_f32 = jax.block_until_ready(
        predictor_forward(state, params, compute_dtype=jnp.float32))
    assert out_f32.shape == (batch, 1)
    assert jnp.allclose(out_f32, ref, atol=1e-4, rtol=1e-4), "f32 mismatch vs reference"

    # Default fast path (bf16 MXU operands, f32 accumulation): looser tolerance.
    out_bf16 = jax.block_until_ready(predictor_forward(state, params))
    assert out_bf16.shape == (batch, 1)
    assert jnp.allclose(out_bf16, ref, atol=1e-1, rtol=5e-2), "bf16 mismatch vs reference"

    print("KERNEL_OK")
</pallas_src>

<mosaic_0001>
module attributes {stable_mosaic.version = 11 : i64} {
  func.func @_mlp_kernel(%arg0: i32, %arg1: memref<128x32xf32, #tpu.memory_space<vmem>>, %arg2: memref<32x256xf32, #tpu.memory_space<vmem>>, %arg3: memref<1x256xf32, #tpu.memory_space<vmem>>, %arg4: memref<256x256xf32, #tpu.memory_space<vmem>>, %arg5: memref<1x256xf32, #tpu.memory_space<vmem>>, %arg6: memref<1x256xf32, #tpu.memory_space<vmem>>, %arg7: memref<1xf32, #tpu.memory_space<smem>>, %arg8: memref<1x128xf32, #tpu.memory_space<vmem>>) attributes {dimension_semantics = [#tpu.dimension_semantics<parallel>], iteration_bounds = array<i64: 2>, scalar_prefetch = 0 : i64, scratch_operands = 0 : i64, tpu.core_type = #tpu.core_type<tc>, window_params = [{transform_indices = @transform_0, window_bounds = array<i64: 128, 32>}, {pipeline_mode = #tpu.pipeline_mode<synchronous>, transform_indices = @transform_1, window_bounds = array<i64: 32, 256>}, {pipeline_mode = #tpu.pipeline_mode<synchronous>, transform_indices = @transform_2, window_bounds = array<i64: 1, 256>}, {pipeline_mode = #tpu.pipeline_mode<synchronous>, transform_indices = @transform_3, window_bounds = array<i64: 256, 256>}, {pipeline_mode = #tpu.pipeline_mode<synchronous>, transform_indices = @transform_4, window_bounds = array<i64: 1, 256>}, {pipeline_mode = #tpu.pipeline_mode<synchronous>, transform_indices = @transform_5, window_bounds = array<i64: 1, 256>}, {transform_indices = @transform_6, window_bounds = array<i64: 1>}, {transform_indices = @transform_7, window_bounds = array<i64: 1, 128>}]} {
    %c0 = arith.constant 0 : index
    %c0_0 = arith.constant 0 : index
    %0 = vector.load %arg1[%c0, %c0_0] : memref<128x32xf32, #tpu.memory_space<vmem>>, vector<128x32xf32>
    %c0_1 = arith.constant 0 : index
    %c0_2 = arith.constant 0 : index
    %1 = vector.load %arg2[%c0_1, %c0_2] : memref<32x256xf32, #tpu.memory_space<vmem>>, vector<32x256xf32>
    %cst = arith.constant dense<0.000000e+00> : vector<128x256xf32>
    %2 = tpu.matmul %0, %1, %cst {dimension_numbers = #tpu.dot_dimension_numbers<[1], [0], [0], [1], [0, 0, 1, 1], [], []>} : vector<128x32xf32>, vector<32x256xf32>, vector<128x256xf32> -> vector<128x256xf32>
    %c0_3 = arith.constant 0 : index
    %c0_4 = arith.constant 0 : index
    %3 = vector.load %arg3[%c0_3, %c0_4] : memref<1x256xf32, #tpu.memory_space<vmem>>, vector<1x256xf32>
    %4 = vector.broadcast %3 : vector<1x256xf32> to vector<128x256xf32>
    %5 = arith.addf %2, %4 : vector<128x256xf32>
    %cst_5 = arith.constant 0.000000e+00 : f32
    %6 = vector.broadcast %cst_5 : f32 to vector<128x256xf32>
    %7 = arith.maximumf %5, %6 : vector<128x256xf32>
    %c0_6 = arith.constant 0 : index
    %c0_7 = arith.constant 0 : index
    %8 = vector.load %arg4[%c0_6, %c0_7] : memref<256x256xf32, #tpu.memory_space<vmem>>, vector<256x256xf32>
    %cst_8 = arith.constant dense<0.000000e+00> : vector<128x256xf32>
    %9 = tpu.matmul %7, %8, %cst_8 {dimension_numbers = #tpu.dot_dimension_numbers<[1], [0], [0], [1], [0, 0, 1, 1], [], []>} : vector<128x256xf32>, vector<256x256xf32>, vector<128x256xf32> -> vector<128x256xf32>
    %c0_9 = arith.constant 0 : index
    %c0_10 = arith.constant 0 : index
    %10 = vector.load %arg5[%c0_9, %c0_10] : memref<1x256xf32, #tpu.memory_space<vmem>>, vector<1x256xf32>
    %11 = vector.broadcast %10 : vector<1x256xf32> to vector<128x256xf32>
    %12 = arith.addf %9, %11 : vector<128x256xf32>
    %cst_11 = arith.constant 0.000000e+00 : f32
    %13 = vector.broadcast %cst_11 : f32 to vector<128x256xf32>
    %14 = arith.maximumf %12, %13 : vector<128x256xf32>
    %c0_12 = arith.constant 0 : index
    %c0_13 = arith.constant 0 : index
    %15 = vector.load %arg6[%c0_12, %c0_13] : memref<1x256xf32, #tpu.memory_space<vmem>>, vector<1x256xf32>
    %16 = vector.broadcast %15 : vector<1x256xf32> to vector<128x256xf32>
    %17 = arith.mulf %14, %16 : vector<128x256xf32>
    %cst_14 = arith.constant dense<0.000000e+00> : vector<128xf32>
    %18 = vector.multi_reduction <add>, %17, %cst_14 [1] : vector<128x256xf32> to vector<128xf32>
    %c0_15 = arith.constant 0 : index
    %19 = memref.load %arg7[%c0_15] : memref<1xf32, #tpu.memory_space<smem>>
    %20 = vector.broadcast %19 : f32 to vector<128xf32>
    %21 = arith.addf %18, %20 : vector<128xf32>
    %22 = vector.shape_cast %21 : vector<128xf32> to vector<1x128xf32>
    %c0_16 = arith.constant 0 : index
    %c0_17 = arith.constant 0 : index
    %23 = vector.load %arg8[%c0_16, %c0_17] : memref<1x128xf32, #tpu.memory_space<vmem>>, vector<1x128xf32>
    tpu.vector_store %arg8[%c0_16, %c0_17], %22 {strides = array<i32>} : memref<1x128xf32, #tpu.memory_space<vmem>>, vector<1x128xf32>,
    return
  }
  func.func @transform_0(%arg0: i32) -> (i32, i32) {
    %c0_i32 = arith.constant 0 : i32
    %c0_i32_0 = arith.constant 0 : i32
    return %arg0, %c0_i32 : i32, i32
  }
  func.func @transform_1(%arg0: i32) -> (i32, i32) {
    %c0_i32 = arith.constant 0 : i32
    %c0_i32_0 = arith.constant 0 : i32
    %c0_i32_1 = arith.constant 0 : i32
    return %c0_i32, %c0_i32_0 : i32, i32
  }
  func.func @transform_2(%arg0: i32) -> (i32, i32) {
    %c0_i32 = arith.constant 0 : i32
    %c0_i32_0 = arith.constant 0 : i32
    %c0_i32_1 = arith.constant 0 : i32
    return %c0_i32, %c0_i32_0 : i32, i32
  }
  func.func @transform_3(%arg0: i32) -> (i32, i32) {
    %c0_i32 = arith.constant 0 : i32
    %c0_i32_0 = arith.constant 0 : i32
    %c0_i32_1 = arith.constant 0 : i32
    return %c0_i32, %c0_i32_0 : i32, i32
  }
  func.func @transform_4(%arg0: i32) -> (i32, i32) {
    %c0_i32 = arith.constant 0 : i32
    %c0_i32_0 = arith.constant 0 : i32
    %c0_i32_1 = arith.constant 0 : i32
    return %c0_i32, %c0_i32_0 : i32, i32
  }
  func.func @transform_5(%arg0: i32) -> (i32, i32) {
    %c0_i32 = arith.constant 0 : i32
    %c0_i32_0 = arith.constant 0 : i32
    %c0_i32_1 = arith.constant 0 : i32
    return %c0_i32, %c0_i32_0 : i32, i32
  }
  func.func @transform_6(%arg0: i32) -> i32 {
    %c0_i32 = arith.constant 0 : i32
    %c0_i32_0 = arith.constant 0 : i32
    return %c0_i32 : i32
  }
  func.func @transform_7(%arg0: i32) -> (i32, i32) {
    %c0_i32 = arith.constant 0 : i32
    %c0_i32_0 = arith.constant 0 : i32
    return %c0_i32, %arg0 : i32, i32
  }
}

module attributes {stable_mosaic.version = 11 : i64} {
  func.func @_mlp_kernel(%arg0: i32, %arg1: memref<128x32xf32, #tpu.memory_space<vmem>>, %arg2: memref<32x256xf32, #tpu.memory_space<vmem>>, %arg3: memref<1x256xf32, #tpu.memory_space<vmem>>, %arg4: memref<256x256xf32, #tpu.memory_space<vmem>>, %arg5: memref<1x256xf32, #tpu.memory_space<vmem>>, %arg6: memref<1x256xf32, #tpu.memory_space<vmem>>, %arg7: memref<1xf32, #tpu.memory_space<smem>>, %arg8: memref<1x128xf32, #tpu.memory_space<vmem>>) attributes {dimension_semantics = [#tpu.dimension_semantics<parallel>], iteration_bounds = array<i64: 2>, scalar_prefetch = 0 : i64, scratch_operands = 0 : i64, tpu.core_type = #tpu.core_type<tc>, window_params = [{transform_indices = @transform_0, window_bounds = array<i64: 128, 32>}, {pipeline_mode = #tpu.pipeline_mode<synchronous>, transform_indices = @transform_1, window_bounds = array<i64: 32, 256>}, {pipeline_mode = #tpu.pipeline_mode<synchronous>, transform_indices = @transform_2, window_bounds = array<i64: 1, 256>}, {pipeline_mode = #tpu.pipeline_mode<synchronous>, transform_indices = @transform_3, window_bounds = array<i64: 256, 256>}, {pipeline_mode = #tpu.pipeline_mode<synchronous>, transform_indices = @transform_4, window_bounds = array<i64: 1, 256>}, {pipeline_mode = #tpu.pipeline_mode<synchronous>, transform_indices = @transform_5, window_bounds = array<i64: 1, 256>}, {transform_indices = @transform_6, window_bounds = array<i64: 1>}, {transform_indices = @transform_7, window_bounds = array<i64: 1, 128>}]} {
    %c0 = arith.constant 0 : index
    %c0_0 = arith.constant 0 : index
    %0 = vector.load %arg1[%c0, %c0_0] : memref<128x32xf32, #tpu.memory_space<vmem>>, vector<128x32xf32>
    %c0_1 = arith.constant 0 : index
    %c0_2 = arith.constant 0 : index
    %1 = vector.load %arg2[%c0_1, %c0_2] : memref<32x256xf32, #tpu.memory_space<vmem>>, vector<32x256xf32>
    %cst = arith.constant dense<0.000000e+00> : vector<128x256xf32>
    %2 = tpu.matmul %0, %1, %cst {dimension_numbers = #tpu.dot_dimension_numbers<[1], [0], [0], [1], [0, 0, 1, 1], [], []>} : vector<128x32xf32>, vector<32x256xf32>, vector<128x256xf32> -> vector<128x256xf32>
    %c0_3 = arith.constant 0 : index
    %c0_4 = arith.constant 0 : index
    %3 = vector.load %arg3[%c0_3, %c0_4] : memref<1x256xf32, #tpu.memory_space<vmem>>, vector<1x256xf32>
    %4 = vector.broadcast %3 : vector<1x256xf32> to vector<128x256xf32>
    %5 = arith.addf %2, %4 : vector<128x256xf32>
    %cst_5 = arith.constant 0.000000e+00 : f32
    %6 = vector.broadcast %cst_5 : f32 to vector<128x256xf32>
    %7 = arith.maximumf %5, %6 : vector<128x256xf32>
    %c0_6 = arith.constant 0 : index
    %c0_7 = arith.constant 0 : index
    %8 = vector.load %arg4[%c0_6, %c0_7] : memref<256x256xf32, #tpu.memory_space<vmem>>, vector<256x256xf32>
    %cst_8 = arith.constant dense<0.000000e+00> : vector<128x256xf32>
    %9 = tpu.matmul %7, %8, %cst_8 {dimension_numbers = #tpu.dot_dimension_numbers<[1], [0], [0], [1], [0, 0, 1, 1], [], []>} : vector<128x256xf32>, vector<256x256xf32>, vector<128x256xf32> -> vector<128x256xf32>
    %c0_9 = arith.constant 0 : index
    %c0_10 = arith.constant 0 : index
    %10 = vector.load %arg5[%c0_9, %c0_10] : memref<1x256xf32, #tpu.memory_space<vmem>>, vector<1x256xf32>
    %11 = vector.broadcast %10 : vector<1x256xf32> to vector<128x256xf32>
    %12 = arith.addf %9, %11 : vector<128x256xf32>
    %cst_11 = arith.constant 0.000000e+00 : f32
    %13 = vector.broadcast %cst_11 : f32 to vector<128x256xf32>
    %14 = arith.maximumf %12, %13 : vector<128x256xf32>
    %c0_12 = arith.constant 0 : index
    %c0_13 = arith.constant 0 : index
    %15 = vector.load %arg6[%c0_12, %c0_13] : memref<1x256xf32, #tpu.memory_space<vmem>>, vector<1x256xf32>
    %16 = vector.broadcast %15 : vector<1x256xf32> to vector<128x256xf32>
    %17 = arith.mulf %14, %16 : vector<128x256xf32>
    %cst_14 = arith.constant dense<0.000000e+00> : vector<128xf32>
    %18 = vector.multi_reduction <add>, %17, %cst_14 [1] : vector<128x256xf32> to vector<128xf32>
    %c0_15 = arith.constant 0 : index
    %19 = memref.load %arg7[%c0_15] : memref<1xf32, #tpu.memory_space<smem>>
    %20 = vector.broadcast %19 : f32 to vector<128xf32>
    %21 = arith.addf %18, %20 : vector<128xf32>
    %22 = vector.shape_cast %21 : vector<128xf32> to vector<1x128xf32>
    %c0_16 = arith.constant 0 : index
    %c0_17 = arith.constant 0 : index
    %23 = vector.load %arg8[%c0_16, %c0_17] : memref<1x128xf32, #tpu.memory_space<vmem>>, vector<1x128xf32>
    tpu.vector_store %arg8[%c0_16, %c0_17], %22 {strides = array<i32>} : memref<1x128xf32, #tpu.memory_space<vmem>>, vector<1x128xf32>,
    return
  }
  func.func @transform_0(%arg0: i32) -> (i32, i32) {
    %c0_i32 = arith.constant 0 : i32
    %c0_i32_0 = arith.constant 0 : i32
    return %arg0, %c0_i32 : i32, i32
  }
  func.func @transform_1(%arg0: i32) -> (i32, i32) {
    %c0_i32 = arith.constant 0 : i32
    %c0_i32_0 = arith.constant 0 : i32
    %c0_i32_1 = arith.constant 0 : i32
    return %c0_i32, %c0_i32_0 : i32, i32
  }
  func.func @transform_2(%arg0: i32) -> (i32, i32) {
    %c0_i32 = arith.constant 0 : i32
    %c0_i32_0 = arith.constant 0 : i32
    %c0_i32_1 = arith.constant 0 : i32
    return %c0_i32, %c0_i32_0 : i32, i32
  }
  func.func @transform_3(%arg0: i32) -> (i32, i32) {
    %c0_i32 = arith.constant 0 : i32
    %c0_i32_0 = arith.constant 0 : i32
    %c0_i32_1 = arith.constant 0 : i32
    return %c0_i32, %c0_i32_0 : i32, i32
  }
  func.func @transform_4(%arg0: i32) -> (i32, i32) {
    %c0_i32 = arith.constant 0 : i32
    %c0_i32_0 = arith.constant 0 : i32
    %c0_i32_1 = arith.constant 0 : i32
    return %c0_i32, %c0_i32_0 : i32, i32
  }
  func.func @transform_5(%arg0: i32) -> (i32, i32) {
    %c0_i32 = arith.constant 0 : i32
    %c0_i32_0 = arith.constant 0 : i32
    %c0_i32_1 = arith.constant 0 : i32
    return %c0_i32, %c0_i32_0 : i32, i32
  }
  func.func @transform_6(%arg0: i32) -> i32 {
    %c0_i32 = arith.constant 0 : i32
    %c0_i32_0 = arith.constant 0 : i32
    return %c0_i32 : i32
  }
  func.func @transform_7(%arg0: i32) -> (i32, i32) {
    %c0_i32 = arith.constant 0 : i32
    %c0_i32_0 = arith.constant 0 : i32
    return %c0_i32, %arg0 : i32, i32
  }
}

</mosaic_0001>

<bundles_post_ra>
// kernel: tpu_custom_call.1
= control target key start
LH: loop header
LB: loop body
LE: loop exit
PB: predicated region body
PF: predicated region fallthrough
CT: control target
= control target key end

     0   :  { %s1973_s0 = inlined_call_operand.vmem [shape: f32[256,32], index: 0, kind: input, shape index: {}]   ;;  %s1974_s1 = inlined_call_operand.vmem [shape: f32[32,256], index: 1, kind: input, shape index: {}]   ;;  %s1975_s2 = inlined_call_operand.vmem [shape: f32[1,256], index: 2, kind: input, shape index: {}]   ;;  %s1976_s3 = inlined_call_operand.hbm [shape: f32[256,256], index: 3, kind: input, shape index: {}]   ;;  %s1977_s4 = inlined_call_operand.vmem [shape: f32[1,256], index: 4, kind: input, shape index: {}]   ;;  %s1978_s5 = inlined_call_operand.vmem [shape: f32[1,256], index: 5, kind: input, shape index: {}]   ;;  %s1979_s6 = inlined_call_operand.<no memory space> [shape: f32[1], index: 6, kind: input, shape index: {}]   ;;  %s1980_s7 = inlined_call_operand.hbm [shape: f32[1,256], index: 7, kind: output, shape index: {}]  }
   0x1   :  { %12 = sst [smem:[#allocation2]] %s1979_s6 }
   0x2   :  { %13 = vsyncpa [#allocation4], 0 }
   0x3   :  { %14 = vsyncpa [#allocation5], 0 }
   0x4   :  { %16 = vsyncpa [#allocation5 + $0x1], 0  ;;  %s1444_s26 = smov 0   ;;  %s1446_s27 = smov 0  }
   0x5   :  { %s1448_s28 = smov 0   ;;  %s1450_s29 = smov 0  }
   0x6 LB: > { %s1465_s6 = sadd.s32 4294967295, %s1394_s29   ;;  %s1160_s30 = sadd.s32 4294967294, %s1394_s29   ;;  %s1394_s29 = sphi %s1450_s29, %s1988_s29   ;;  %s1390_s28 = sphi %s1448_s28, %s1987_s28   ;;  %s1386_s27 = sphi %s1446_s27, %s1986_s27   ;;  %s1382_s26 = sphi %s1444_s26, %s1985_s26  }
   0x7   : > { %s1469_s8 = sadd.s32 1, %s1394_s29   ;;  %s181_s9 = sadd.s32 1, %s1390_s28 }
   0x8   : > { %s178_s10 = ssub.s32 %s1394_s29, %s1469_s8  ;;  %p191_p0 = scmp.ne.s32.totalorder %s1390_s28, %s1386_s27 }
   0x9   : > { %p179_p1 = scmp.eq.s32.totalorder %s178_s10, 0  ;;  %p192_p2 = scmp.eq.s32.totalorder %s1465_s6, 1 }
   0xa   : > { %p197_p3 = scmp.ne.s32.totalorder %s1386_s27, %s1382_s26  ;;  %p198_p4 = scmp.eq.s32.totalorder %s1160_s30, 1 }
   0xb   : > { %s1480_s11 = scalar_select %p179_p1, %s1390_s28, %s181_s9  }
   0xc   : > { %p1482_p5 = por %p192_p2, %p191_p0  ;;  %p1486_p6 = por %p198_p4, %p197_p3 }
   0xd   : > { %p1161_p7 = scmp.ge.s32.totalorder %s1394_s29, 1  ;;  %p205_p8 = scmp.lt.s32.totalorder %s1394_s29, 3 }
   0xe   : > { %s1982_s13 = scalar_select %p1486_p6, 1, 0 }
   0xf   : > { %p1265_p9 = scmp.eq.s32.totalorder %s1465_s6, 0  ;;  %p1493_p10 = pnand %p1161_p7, %p205_p8 }
  0x10   : > { %s1396_s15 = smov [#allocation3]  }
  0x11   : > { %s223_s16 = sshll.u32 %s1396_s15, 4  ;;  %p1257_p11 = pneg %p1493_p10  ;;  %s224_s16 = int_to_ptr.vmem [resolvable:$true] %s223_s16 }
  0x12   : > { %s1315_s17 = scalar_lea.vmem %s224_s16, 8192  ;;  %p1323_p3 = scmp.lt.s32.totalorder %s224_s16, %s224_s16 }
  0x13   : > { %p1258_p12 = pnand %p1265_p9, %p1257_p11  ;;  %p1316_p0 = scmp.ne.s32.totalorder %s224_s16, %s1315_s17 }
  0x14   : > { %p1324_p4 = scmp.lt.s32.totalorder %s1315_s17, %s1315_s17 }
  0x15   : > { %p1306_p13 = pneg %p1258_p12 }
  0x16   : > { %p1325_p6 = por %p1324_p4, %p1323_p3 }
  0x17   : > { %p1318_p1 = pnand %p1316_p0, %p1306_p13 }
  0x19   : > { %p1319_p2 = pneg %p1318_p1 }
  0x1b   : > { %p1326_p7 = pnand %p1325_p6, %p1319_p2 }
  0x1d   : > { %1329 = shalt.err (!%p1326_p7)
}
  0x1e   : > { %s1397_s18 = smov 256   ;;  %s1398_s19 = smov 16  }
  0x1f   : > { %1260 = dma.hbm_to_vmem [thread:$0]  (!%p1258_p12), %s1976_s3, 8192, %s224_s16, [#allocation4], %s1397_s18, %s1397_s18, %s1398_s19  }
  0x20   : > { %257 = sbr.rel (%p1493_p10) target bundleno = 666 (0x29a), region = 48 }
  0x25   : > { %1373 = dma.done.wait (%p1265_p9), [#allocation4], 8192  }
  0x26   : > { %1375 = vsyncadd (%p1265_p9), [#allocation4], 4294959104  ;;  %s1511_s22 = sshll.u32 %s1465_s6, 4  ;;  %v1399_v0 = vmov 0.0   ;;  %v317_v1 = vld [vmem:[%s1974_s1 + $0x38] sm:$0xff]  ;;  %v316_v2 = vld [vmem:[%s1974_s1 + $0x30] sm:$0xff] }
  0x27   : > { %443 = vmatprep.mubr.f32.mxu0 %v1399_v0  ;;  %p289_p6 = scmp.lt.s32.totalorder %s1511_s22, 31  ;;  %v315_v3 = vld [vmem:[%s1974_s1 + $0x28] sm:$0xff]  ;;  %403 = vmatprep.subr.mxu0 %v317_v1  ;;  %v314_v4 = vld [vmem:[%s1974_s1 + $0x20] sm:$0xff]  ;;  %v313_v5 = vld [vmem:[%s1974_s1 + $0x18] sm:$0xff]  ;;  %vm330_vm0 = vcmask 261120   ;;  %s933_s19 = sld [smem:[#allocation2]] }
  0x28   : > { %404 = vmatpush1.msra.mxu0 %v316_v2  ;;  %v312_v6 = vld [vmem:[%s1974_s1 + $0x10] sm:$0xff]  ;;  %v311_v7 = vld [vmem:[%s1974_s1 + $0x8] sm:$0xff]  ;;  %v310_v8 = vld [vmem:[%s1974_s1] sm:$0xff]  ;;  %vm978_vm1 = vcmask 130112   ;;  %vm985_vm2 = vcmask 195712   ;;  %vm992_vm3 = vcmask 261312   ;;  %s1936_s30 = scalar_lea.hbm %s1980_s7, %s1511_s22 }
  0x29   : > { %s290_s23 = scalar_select %p289_p6, %s1511_s22, 31  ;;  %405 = vmatprep.subr.mxu0 %v315_v3  ;;  %v603_v10 = vld [vmem:[#allocation3 + $0xf8] sm:$0xff]  ;;  %v602_v11 = vld [vmem:[#allocation3 + $0xf0] sm:$0xff]  ;;  %v601_v12 = vld [vmem:[#allocation3 + $0xe8] sm:$0xff]  ;;  %vm999_vm4 = vcmask 326912   ;;  %vm1006_vm5 = vcmask 392512  }
  0x2a   : > { %406 = vmatpush1.msra.mxu0 %v314_v4  ;;  %v600_v13 = vld [vmem:[#allocation3 + $0xe0] sm:$0xff]  ;;  %v599_v15 = vld [vmem:[#allocation3 + $0xd8] sm:$0xff]  ;;  %v598_v16 = vld [vmem:[#allocation3 + $0xd0] sm:$0xff]  ;;  %1187 = vmatprep.subr.mxu1 %v603_v10  ;;  %vm1013_vm6 = vcmask 458112   ;;  %vm1020_vm7 = vcmask 523712   ;;  %vm1027_vm8 = vcmask 589312  }
  0x2b   : > { %s1167_s6 = sshll.u32 %s290_s23, 3  ;;  %407 = vmatprep.subr.mxu0 %v313_v5  ;;  %v597_v17 = vld [vmem:[#allocation3 + $0xc8] sm:$0xff]  ;;  %1219 = vmatpush1.msra.mxu1 %v602_v11  ;;  %v596_v18 = vld [vmem:[#allocation3 + $0xc0] sm:$0xff]  ;;  %v595_v20 = vld [vmem:[#allocation3 + $0xb8] sm:$0xff]  ;;  %s286_s20 = sand.u32 1, %s1386_s27   ;;  %vm1034_vm9 = vcmask 654912  }
  0x2c   : > { %s1537_s25 = scalar_lea.vmem %s1973_s0, %s1167_s6  ;;  %408 = vmatpush1.msra.mxu0 %v312_v6  ;;  %v594_v21 = vld [vmem:[#allocation3 + $0xb0] sm:$0xff]  ;;  %1188 = vmatprep.subr.mxu1 %v601_v12  ;;  %v593_v22 = vld [vmem:[#allocation3 + $0xa8] sm:$0xff]  ;;  %v592_v23 = vld [vmem:[#allocation3 + $0xa0] sm:$0xff]  ;;  %vm1041_vm10 = vcmask 720512   ;;  %vm1048_vm11 = vcmask 786112   ;;  %vm1055_vm12 = vcmask 851712  }
  0x2d   : > { %v294_v9 = vld [vmem:[%s1537_s25] sm:$0xff]  ;;  %409 = vmatprep.subr.mxu0 %v311_v7  ;;  %v295_v14 = vld [vmem:[%s1537_s25 + $0x8] sm:$0xff]  ;;  %v296_v19 = vld [vmem:[%s1537_s25 + $0x10] sm:$0xff]  ;;  %1220 = vmatpush1.msra.mxu1 %v600_v13  ;;  %vm1062_vm13 = vcmask 917312   ;;  %vm1069_vm14 = vcmask 982912   ;;  %s287_s21 = scalar_lea.vmem [#allocation6], %s286_s20 }
  0x2e   : > { %410 = vmatpush1.msra.mxu0 %v310_v8  ;;  %v297_v24 = vld [vmem:[%s1537_s25 + $0x18] sm:$0xff]  ;;  %v590_v26 = vld [vmem:[#allocation3 + $0x90] sm:$0xff]  ;;  %1189 = vmatprep.subr.mxu1 %v599_v15  ;;  %v589_v27 = vld [vmem:[#allocation3 + $0x88] sm:$0xff]  ;;  %s1093_s24 = sshll.u32 %s287_s21, 4  ;;  %vm1076_vm15 = vcmask 1048512   ;;  %s1081_s9 = scalar_lea.sflag [#allocation5], %s286_s20  ;;  %s1094_s24 = int_to_ptr.vmem [resolvable:$true] %s1093_s24 }
  0x2f   : > { %1168 = vmatmul.mubr.msk.f32.vlgmr.msra.gmra.mxu0 %vm330_vm0, %v294_v9  ;;  %648 = vmatprep.subr.mxu0 %v603_v10  ;;  %v591_v25 = vld [vmem:[#allocation3 + $0x98] sm:$0xff]  ;;  %v588_v28 = vld [vmem:[#allocation3 + $0x80] sm:$0xff]  ;;  %v1560_v31 = vld [vmem:[#allocation3 + $0x70] sm:$0xff]  ;;  %s1330_s10 = scalar_lea.vmem %s1094_s24, 16  ;;  %s1400_s14 = smov [#allocation6]  }
  0x30   : > { %449 = vmatprep.mubr.f32.mxu0 %v1399_v0  ;;  %649 = vmatpush1.msra.mxu0 %v602_v11  ;;  %v298_v29 = vld [vmem:[%s1537_s25 + $0x20] sm:$0xff]  ;;  %v1558_v30 = vld [vmem:[#allocation3 + $0x78] sm:$0xff]  ;;  %v1562_v32 = vld [vmem:[#allocation3 + $0x68] sm:$0xff]  ;;  %p1331_p8 = scmp.ne.s32.totalorder %s1094_s24, %s1330_s10  ;;  %s1334_s6 = sshll.u32 %s1400_s14, 4  ;;  %s1335_s6 = int_to_ptr.vmem [resolvable:$false] %s1334_s6 }
  0x31   : > { %650 = vmatprep.subr.mxu0 %v601_v12  ;;  %1221 = vmatpush1.msra.mxu1 %v598_v16  ;;  %v1566_v33 = vld [vmem:[#allocation3 + $0x60] sm:$0xff]  ;;  %v299_v34 = vld [vmem:[%s1537_s25 + $0x28] sm:$0xff]  ;;  %v1571_v35 = vld [vmem:[#allocation3 + $0x58] sm:$0xff]  ;;  %s1336_s15 = scalar_lea.vmem %s1335_s6, 32  ;;  %p1337_p11 = scmp.lt.s32.totalorder %s1094_s24, %s1335_s6 }
  0x32   : > { %651 = vmatpush1.msra.mxu0 %v600_v13  ;;  %1190 = vmatprep.subr.mxu1 %v597_v17  ;;  %v1574_v36 = vld [vmem:[#allocation3 + $0x50] sm:$0xff]  ;;  %v1577_v37 = vld [vmem:[#allocation3 + $0x48] sm:$0xff]  ;;  %v1581_v38 = vld [vmem:[#allocation3 + $0x40] sm:$0xff]  ;;  %p1332_p9 = pnand %p1331_p8, %p1482_p5  ;;  %p1338_p12 = scmp.lt.s32.totalorder %s1336_s15, %s1330_s10 }
  0x33   : > { %1169 = vmatmul.mubr.msk.f32.gmra.mxu0 %vm330_vm0, %v295_v14  ;;  %652 = vmatprep.subr.mxu0 %v599_v15  ;;  %v300_v39 = vld [vmem:[%s1537_s25 + $0x30] sm:$0xff]  ;;  %v1586_v40 = vld [vmem:[#allocation3 + $0x38] sm:$0xff]  ;;  %v1592_v42 = vld [vmem:[#allocation3 + $0x28] sm:$0xff] }
  0x34   : > { %455 = vmatprep.mubr.f32.mxu0 %v1399_v0  ;;  %653 = vmatpush1.msra.mxu0 %v598_v16  ;;  %v1589_v41 = vld [vmem:[#allocation3 + $0x30] sm:$0xff]  ;;  %v1596_v43 = vld [vmem:[#allocation3 + $0x20] sm:$0xff]  ;;  %v301_v44 = vld [vmem:[%s1537_s25 + $0x38] sm:$0xff]  ;;  %p1333_p10 = pneg %p1332_p9  ;;  %p1339_p13 = por %p1338_p12, %p1337_p11 }
  0x35   : > { %654 = vmatprep.subr.mxu0 %v597_v17  ;;  %1222 = vmatpush1.msra.mxu1 %v596_v18  ;;  %v1601_v45 = vld [vmem:[#allocation3 + $0x18] sm:$0xff]  ;;  %v1604_v46 = vld [vmem:[#allocation3 + $0x10] sm:$0xff]  ;;  %v1607_v47 = vld [vmem:[#allocation3 + $0x8] sm:$0xff] }
  0x36   : > { %655 = vmatpush1.msra.mxu0 %v596_v18  ;;  %1191 = vmatprep.subr.mxu1 %v595_v20  ;;  %v1611_v48 = vld [vmem:[#allocation3] sm:$0xff]  ;;  %v1616_v50 = vld [vmem:[#allocation3 + $0x1f8] sm:$0xff]  ;;  %v1619_v51 = vld [vmem:[#allocation3 + $0x1f0] sm:$0xff]  ;;  %p1340_p0 = pnand %p1339_p13, %p1333_p10 }
  0x37   : > { %1170 = vmatmul.mubr.msk.f32.gmra.mxu0 %vm330_vm0, %v296_v19  ;;  %656 = vmatprep.subr.mxu0 %v595_v20  ;;  %v302_v49 = vld [vmem:[%s1537_s25 + $0x40] sm:$0xff]  ;;  %v1622_v52 = vld [vmem:[#allocation3 + $0x1e8] sm:$0xff]  ;;  %v1631_v55 = vld [vmem:[#allocation3 + $0x1d8] sm:$0xff] }
  0x38   : > { %461 = vmatprep.mubr.f32.mxu0 %v1399_v0  ;;  %657 = vmatpush1.msra.mxu0 %v594_v21  ;;  %v1626_v53 = vld [vmem:[#allocation3 + $0x1e0] sm:$0xff]  ;;  %v303_v54 = vld [vmem:[%s1537_s25 + $0x48] sm:$0xff]  ;;  %v1634_v56 = vld [vmem:[#allocation3 + $0x1d0] sm:$0xff] }
  0x39   : > { %658 = vmatprep.subr.mxu0 %v593_v22  ;;  %1223 = vmatpush1.msra.mxu1 %v594_v21  ;;  %v1638_v57 = vld [vmem:[#allocation3 + $0x1c8] sm:$0xff]  ;;  %v1643_v58 = vld [vmem:[#allocation3 + $0x1c0] sm:$0xff]  ;;  %v304_v59 = vld [vmem:[%s1537_s25 + $0x50] sm:$0xff] }
  0x3a   : > { %659 = vmatpush1.msra.mxu0 %v592_v23  ;;  %1192 = vmatprep.subr.mxu1 %v593_v22  ;;  %v1648_v60 = vld [vmem:[#allocation3 + $0x1b8] sm:$0xff]  ;;  %v1651_v61 = vld [vmem:[#allocation3 + $0x1b0] sm:$0xff]  ;;  %v1655_v62 = vld [vmem:[#allocation3 + $0x1a8] sm:$0xff] }
  0x3b   : > { %1171 = vmatmul.mubr.msk.f32.gmra.mxu0 %vm330_vm0, %v297_v24  ;;  %660 = vmatprep.subr.mxu0 %v591_v25  ;;  %v1660_v63 = vld [vmem:[#allocation3 + $0x1a0] sm:$0xff]  ;;  %v305_v1 = vld [vmem:[%s1537_s25 + $0x58] sm:$0xff]  ;;  %v1668_v3 = vld [vmem:[#allocation3 + $0x190] sm:$0xff] }
  0x3c   : > { %467 = vmatprep.mubr.f32.mxu0 %v1399_v0  ;;  %661 = vmatpush1.msra.mxu0 %v590_v26  ;;  %v1665_v2 = vld [vmem:[#allocation3 + $0x198] sm:$0xff]  ;;  %v1672_v4 = vld [vmem:[#allocation3 + $0x188] sm:$0xff]  ;;  %v1677_v5 = vld [vmem:[#allocation3 + $0x180] sm:$0xff] }
  0x3d   : > { %662 = vmatprep.subr.mxu0 %v589_v27  ;;  %1224 = vmatpush1.msra.mxu1 %v592_v23  ;;  %v306_v6 = vld [vmem:[%s1537_s25 + $0x60] sm:$0xff]  ;;  %v1682_v7 = vld [vmem:[#allocation3 + $0x178] sm:$0xff]  ;;  %v1685_v8 = vld [vmem:[#allocation3 + $0x170] sm:$0xff] }
  0x3e   : > { %663 = vmatpush1.msra.mxu0 %v588_v28  ;;  %1193 = vmatprep.subr.mxu1 %v591_v25  ;;  %v1689_v9 = vld [vmem:[#allocation3 + $0x168] sm:$0xff]  ;;  %v1694_v10 = vld [vmem:[#allocation3 + $0x160] sm:$0xff]  ;;  %v615_v12 = vld [vmem:[#allocation3 + $0x158] sm:$0xff]  ;;  %v320_v25 = vlaneseq }
  0x3f   : > { %1172 = vmatmul.mubr.msk.f32.gmra.mxu0 %vm330_vm0, %v298_v29  ;;  %664 = vmatprep.subr.mxu0 %v1558_v30  ;;  %v307_v11 = vld [vmem:[%s1537_s25 + $0x68] sm:$0xff]  ;;  %v614_v13 = vld [vmem:[#allocation3 + $0x150] sm:$0xff]  ;;  %v612_v15 = vld [vmem:[#allocation3 + $0x140] sm:$0xff] }
  0x40   : > { %473 = vmatprep.mubr.f32.mxu0 %v1399_v0  ;;  %665 = vmatpush1.msra.mxu0 %v1560_v31  ;;  %v613_v14 = vld [vmem:[#allocation3 + $0x148] sm:$0xff]  ;;  %v308_v16 = vld [vmem:[%s1537_s25 + $0x70] sm:$0xff]  ;;  %v309_v17 = vld [vmem:[%s1537_s25 + $0x78] sm:$0xff] }
  0x41   : > { %666 = vmatprep.subr.mxu0 %v1562_v32  ;;  %1225 = vmatpush1.msra.mxu1 %v590_v26  ;;  %v611_v18 = vld [vmem:[#allocation3 + $0x138] sm:$0xff]  ;;  %v609_v19 = vld [vmem:[#allocation3 + $0x128] sm:$0xff]  ;;  %v608_v20 = vld [vmem:[#allocation3 + $0x120] sm:$0xff]  ;;  %v1737_v26 = vshrl.u32 %v320_v25, 7 }
  0x42   : > { %667 = vmatpush1.msra.mxu0 %v1566_v33  ;;  %1194 = vmatprep.subr.mxu1 %v589_v27  ;;  %v607_v21 = vld [vmem:[#allocation3 + $0x118] sm:$0xff]  ;;  %v606_v22 = vld [vmem:[#allocation3 + $0x110] sm:$0xff]  ;;  %v605_v23 = vld [vmem:[#allocation3 + $0x108] sm:$0xff] }
  0x43   : > { %1173 = vmatmul.mubr.msk.f32.gmra.mxu0 %vm330_vm0, %v299_v34  ;;  %668 = vmatprep.subr.mxu0 %v1571_v35  ;;  %v604_v24 = vld [vmem:[#allocation3 + $0x100] sm:$0xff]  ;;  %v1740_v27 = vsub.s32 0, %v1737_v26  ;;  %v1746_v29 = vsub.s32 1, %v1737_v26 }
  0x44   : > { %479 = vmatprep.mubr.f32.mxu0 %v1399_v0  ;;  %669 = vmatpush1.msra.mxu0 %v1574_v36 }
  0x45   : > { %670 = vmatprep.subr.mxu0 %v1577_v37  ;;  %1226 = vmatpush1.msra.mxu1 %v588_v28  ;;  %v318_v28 = vld [vmem:[%s1975_s2] sm:$0x3] }
  0x46   : > { %671 = vmatpush1.msra.mxu0 %v1581_v38  ;;  %1195 = vmatprep.subr.mxu1 %v1558_v30  ;;  %v1749_v30 = vrot.slane %v318_v28, %v1740_v27 }
  0x47   : > { %1174 = vmatmul.mubr.msk.f32.gmra.mxu0 %vm330_vm0, %v300_v39  ;;  %672 = vmatprep.subr.mxu0 %v1586_v40 }
  0x48   : > { %485 = vmatprep.mubr.f32.mxu0 %v1399_v0  ;;  %673 = vmatpush1.msra.mxu0 %v1589_v41 }
  0x49   : > { %674 = vmatprep.subr.mxu0 %v1592_v42  ;;  %1227 = vmatpush1.msra.mxu1 %v1560_v31  ;;  %v1752_v31 = vrot.slane %v318_v28, %v1746_v29 }
  0x4a   : > { %675 = vmatpush1.msra.mxu0 %v1596_v43  ;;  %1196 = vmatprep.subr.mxu1 %v1562_v32 }
  0x4b   : > { %1175 = vmatmul.mubr.msk.f32.gmra.mxu0 %vm330_vm0, %v301_v44  ;;  %676 = vmatprep.subr.mxu0 %v1601_v45 }
  0x4c   : > { %491 = vmatprep.mubr.f32.mxu0 %v1399_v0  ;;  %677 = vmatpush1.msra.mxu0 %v1604_v46 }
  0x4d   : > { %678 = vmatprep.subr.mxu0 %v1607_v47  ;;  %1228 = vmatpush1.msra.mxu1 %v1566_v33 }
  0x4e   : > { %679 = vmatpush1.msra.mxu0 %v1611_v48  ;;  %1197 = vmatprep.subr.mxu1 %v1571_v35 }
  0x4f   : > { %1176 = vmatmul.mubr.msk.f32.gmra.mxu0 %vm330_vm0, %v302_v49  ;;  %680 = vmatprep.subr.mxu0 %v1616_v50 }
  0x50   : > { %497 = vmatprep.mubr.f32.mxu0 %v1399_v0  ;;  %681 = vmatpush2.msra.mxu0 %v1619_v51 }
  0x51   : > { %682 = vmatprep.subr.mxu0 %v1622_v52  ;;  %1229 = vmatpush1.msra.mxu1 %v1574_v36 }
  0x52   : > { %683 = vmatpush2.msra.mxu0 %v1626_v53  ;;  %1198 = vmatprep.subr.mxu1 %v1577_v37 }
  0x53   : > { %1177 = vmatmul.mubr.msk.f32.gmra.mxu0 %vm330_vm0, %v303_v54  ;;  %684 = vmatprep.subr.mxu0 %v1631_v55 }
  0x54   : > { %503 = vmatprep.mubr.f32.mxu0 %v1399_v0  ;;  %685 = vmatpush2.msra.mxu0 %v1634_v56 }
  0x55   : > { %686 = vmatprep.subr.mxu0 %v1638_v57  ;;  %1230 = vmatpush1.msra.mxu1 %v1581_v38 }
  0x56   : > { %687 = vmatpush2.msra.mxu0 %v1643_v58  ;;  %1199 = vmatprep.subr.mxu1 %v1586_v40 }
  0x57   : > { %1178 = vmatmul.mubr.msk.f32.gmra.mxu0 %vm330_vm0, %v304_v59  ;;  %688 = vmatprep.subr.mxu0 %v1648_v60 }
  0x58   : > { %509 = vmatprep.mubr.f32.mxu0 %v1399_v0  ;;  %689 = vmatpush2.msra.mxu0 %v1651_v61 }
  0x59   : > { %690 = vmatprep.subr.mxu0 %v1655_v62  ;;  %1231 = vmatpush1.msra.mxu1 %v1589_v41 }
  0x5a   : > { %691 = vmatpush2.msra.mxu0 %v1660_v63  ;;  %1200 = vmatprep.subr.mxu1 %v1592_v42 }
  0x5b   : > { %1179 = vmatmul.mubr.msk.f32.gmra.mxu0 %vm330_vm0, %v305_v1  ;;  %692 = vmatprep.subr.mxu0 %v1665_v2 }
  0x5c   : > { %515 = vmatprep.mubr.f32.mxu0 %v1399_v0  ;;  %693 = vmatpush2.msra.mxu0 %v1668_v3 }
  0x5d   : > { %694 = vmatprep.subr.mxu0 %v1672_v4  ;;  %1232 = vmatpush1.msra.mxu1 %v1596_v43 }
  0x5e   : > { %695 = vmatpush2.msra.mxu0 %v1677_v5  ;;  %1201 = vmatprep.subr.mxu1 %v1601_v45 }
  0x5f   : > { %1180 = vmatmul.mubr.msk.f32.gmra.mxu0 %vm330_vm0, %v306_v6  ;;  %696 = vmatprep.subr.mxu0 %v1682_v7 }
  0x60   : > { %521 = vmatprep.mubr.f32.mxu0 %v1399_v0  ;;  %697 = vmatpush2.msra.mxu0 %v1685_v8 }
  0x61   : > { %698 = vmatprep.subr.mxu0 %v1689_v9  ;;  %1233 = vmatpush1.msra.mxu1 %v1604_v46 }
  0x62   : > { %699 = vmatpush2.msra.mxu0 %v1694_v10  ;;  %1202 = vmatprep.subr.mxu1 %v1607_v47 }
  0x63   : > { %1181 = vmatmul.mubr.msk.f32.gmra.mxu0 %vm330_vm0, %v307_v11  ;;  %700 = vmatprep.subr.mxu0 %v615_v12 }
  0x64   : > { %527 = vmatprep.mubr.f32.mxu0 %v1399_v0  ;;  %701 = vmatpush2.msra.mxu0 %v614_v13 }
  0x65   : > { %702 = vmatprep.subr.mxu0 %v613_v14  ;;  %1234 = vmatpush1.msra.mxu1 %v1611_v48 }
  0x66   : > { %703 = vmatpush2.msra.mxu0 %v612_v15  ;;  %1203 = vmatprep.subr.mxu1 %v1616_v50 }
  0x67   : > { %1182 = vmatmul.mubr.msk.f32.gmra.mxu0 %vm330_vm0, %v308_v16  ;;  %1235 = vmatpush2.msra.mxu1 %v1619_v51 }
  0x68   : > { %533 = vmatprep.mubr.f32.mxu0 %v1399_v0  ;;  %1204 = vmatprep.subr.mxu1 %v1622_v52  ;;  %v610_v0 = vld [vmem:[#allocation3 + $0x130] sm:$0xff] }
  0x69   : > { %1236 = vmatpush2.msra.mxu1 %v1626_v53  ;;  %704 = vmatprep.subr.mxu0 %v611_v18 }
  0x6a   : > { %1205 = vmatprep.subr.mxu1 %v1631_v55  ;;  %705 = vmatpush2.msra.mxu0 %v610_v0 }
  0x6b   : > { %1183 = vmatmul.mubr.msk.f32.gmra.mxu0 %vm330_vm0, %v309_v17  ;;  %1237 = vmatpush2.msra.mxu1 %v1634_v56 }
  0x6c   : > { %706 = vmatprep.subr.mxu0 %v609_v19  ;;  %1206 = vmatprep.subr.mxu1 %v1638_v57 }
  0x6d   : > { %707 = vmatpush2.msra.mxu0 %v608_v20  ;;  %1238 = vmatpush2.msra.mxu1 %v1643_v58 }
  0x6e   : > { %708 = vmatprep.subr.mxu0 %v607_v21  ;;  %1207 = vmatprep.subr.mxu1 %v1648_v60 }
  0x6f   : > { %709 = vmatpush2.msra.mxu0 %v606_v22  ;;  %1239 = vmatpush2.msra.mxu1 %v1651_v61 }
  0x70   : > { %710 = vmatprep.subr.mxu0 %v605_v23  ;;  %1208 = vmatprep.subr.mxu1 %v1655_v62 }
  0x71   : > { %711 = vmatpush2.msra.mxu0 %v604_v24  ;;  %1240 = vmatpush2.msra.mxu1 %v1660_v63 }
  0x72   : > { %1209 = vmatprep.subr.mxu1 %v1665_v2 }
  0x73   : > { %1241 = vmatpush2.msra.mxu1 %v1668_v3 }
  0x74   : > { %1210 = vmatprep.subr.mxu1 %v1672_v4 }
  0x75   : > { %1242 = vmatpush2.msra.mxu1 %v1677_v5 }
  0x76   : > { %1211 = vmatprep.subr.mxu1 %v1682_v7 }
  0x77   : > { %1243 = vmatpush2.msra.mxu1 %v1685_v8 }
  0x78   : > { %1212 = vmatprep.subr.mxu1 %v1689_v9 }
  0x79   : > { %1244 = vmatpush2.msra.mxu1 %v1694_v10 }
  0x7a   : > { %1213 = vmatprep.subr.mxu1 %v615_v12 }
  0x7b   : > { %1245 = vmatpush2.msra.mxu1 %v614_v13 }
  0x7c   : > { %1214 = vmatprep.subr.mxu1 %v613_v14 }
  0x7d   : > { %1246 = vmatpush2.msra.mxu1 %v612_v15 }
  0x7e   : > { %1215 = vmatprep.subr.mxu1 %v611_v18 }
  0x7f   : > { %1247 = vmatpush2.msra.mxu1 %v610_v0 }
  0x80   : > { %1216 = vmatprep.subr.mxu1 %v609_v19 }
  0x81   : > { %1248 = vmatpush2.msra.mxu1 %v608_v20 }
  0x82   : > { %1217 = vmatprep.subr.mxu1 %v607_v21 }
  0x83   : > { %1249 = vmatpush2.msra.mxu1 %v606_v22 }
  0x84   : > { %1218 = vmatprep.subr.mxu1 %v605_v23 }
  0x85   : > { %1250 = vmatpush2.msra.mxu1 %v604_v24 }
  0xef   : > { %v445_v32 = vpop.f32.mrf.mxu0 }
  0xf0   : > { %v446_v33 = vadd.f32 %v445_v32, %v1749_v30 }
  0xf1   : > { %v447_v34 = vpop.f32.mrf.mxu0 }
  0xf2   : > { %v448_v35 = vadd.f32 %v447_v34, %v1752_v31  ;;  %v540_v38 = vmax.f32 %v446_v33, 0.0 }
  0xf3   : > { %v451_v36 = vpop.f32.mrf.mxu0 }
  0xf4   : > { %v541_v37 = vmax.f32 %v448_v35, 0.0  ;;  %v452_v39 = vadd.f32 %v451_v36, %v1749_v30 }
  0xf5   : > { %v453_v40 = vpop.f32.mrf.mxu0 }
  0xf6   : > { %v454_v41 = vadd.f32 %v453_v40, %v1752_v31  ;;  %712 = vmatprep.mubr.f32.mxu0 %v541_v37  ;;  %v542_v44 = vmax.f32 %v452_v39, 0.0 }
  0xf7   : > { %v457_v42 = vpop.f32.mrf.mxu0  ;;  %713 = vmatmul.mubr.f32.vlgmr.msra.gmra.mxu0 %v540_v38 }
  0xf8   : > { %v543_v43 = vmax.f32 %v454_v41, 0.0  ;;  %v458_v45 = vadd.f32 %v457_v42, %v1749_v30 }
  0xf9   : > { %v459_v46 = vpop.f32.mrf.mxu0 }
  0xfa   : > { %v460_v47 = vadd.f32 %v459_v46, %v1752_v31  ;;  %718 = vmatprep.mubr.f32.mxu0 %v543_v43  ;;  %v544_v50 = vmax.f32 %v458_v45, 0.0 }
  0xfb   : > { %v463_v48 = vpop.f32.mrf.mxu0  ;;  %719 = vmatmul.mubr.f32.gmra.mxu0 %v542_v44 }
  0xfc   : > { %v545_v49 = vmax.f32 %v460_v47, 0.0  ;;  %v464_v51 = vadd.f32 %v463_v48, %v1749_v30 }
  0xfd   : > { %v465_v52 = vpop.f32.mrf.mxu0 }
  0xfe   : > { %v466_v53 = vadd.f32 %v465_v52, %v1752_v31  ;;  %724 = vmatprep.mubr.f32.mxu0 %v545_v49  ;;  %v546_v56 = vmax.f32 %v464_v51, 0.0 }
  0xff   : > { %v469_v54 = vpop.f32.mrf.mxu0  ;;  %725 = vmatmul.mubr.f32.gmra.mxu0 %v544_v50 }
 0x100   : > { %v547_v55 = vmax.f32 %v466_v53, 0.0  ;;  %v470_v57 = vadd.f32 %v469_v54, %v1749_v30 }
 0x101   : > { %v471_v58 = vpop.f32.mrf.mxu0 }
 0x102   : > { %v472_v59 = vadd.f32 %v471_v58, %v1752_v31  ;;  %730 = vmatprep.mubr.f32.mxu0 %v547_v55  ;;  %v548_v62 = vmax.f32 %v470_v57, 0.0 }
 0x103   : > { %v475_v60 = vpop.f32.mrf.mxu0  ;;  %731 = vmatmul.mubr.f32.gmra.mxu0 %v546_v56 }
 0x104   : > { %v549_v61 = vmax.f32 %v472_v59, 0.0  ;;  %v476_v63 = vadd.f32 %v475_v60, %v1749_v30 }
 0x105   : > { %v477_v1 = vpop.f32.mrf.mxu0 }
 0x106   : > { %v478_v2 = vadd.f32 %v477_v1, %v1752_v31  ;;  %736 = vmatprep.mubr.f32.mxu0 %v549_v61  ;;  %v550_v5 = vmax.f32 %v476_v63, 0.0 }
 0x107   : > { %v481_v3 = vpop.f32.mrf.mxu0  ;;  %737 = vmatmul.mubr.f32.gmra.mxu0 %v548_v62 }
 0x108   : > { %v551_v4 = vmax.f32 %v478_v2, 0.0  ;;  %v482_v6 = vadd.f32 %v481_v3, %v1749_v30 }
 0x109   : > { %v483_v7 = vpop.f32.mrf.mxu0 }
 0x10a   : > { %v484_v8 = vadd.f32 %v483_v7, %v1752_v31  ;;  %742 = vmatprep.mubr.f32.mxu0 %v551_v4  ;;  %v552_v11 = vmax.f32 %v482_v6, 0.0  ;;  %v636_v7 = vld [vmem:[%s1977_s4] sm:$0x3] }
 0x10b   : > { %v487_v9 = vpop.f32.mrf.mxu0  ;;  %743 = vmatmul.mubr.f32.gmra.mxu0 %v550_v5 }
 0x10c   : > { %v553_v10 = vmax.f32 %v484_v8, 0.0  ;;  %v488_v12 = vadd.f32 %v487_v9, %v1749_v30  ;;  %v1790_v8 = vrot.slane %v636_v7, %v1740_v27  ;;  %v1793_v9 = vrot.slane %v636_v7, %v1746_v29 }
 0x10d   : > { %v489_v13 = vpop.f32.mrf.mxu0 }
 0x10e   : > { %748 = vmatprep.mubr.f32.mxu0 %v553_v10  ;;  %v490_v14 = vadd.f32 %v489_v13, %v1752_v31  ;;  %v554_v17 = vmax.f32 %v488_v12, 0.0 }
 0x10f   : > { %v493_v15 = vpop.f32.mrf.mxu0  ;;  %749 = vmatmul.mubr.f32.gmra.mxu0 %v552_v11 }
 0x110   : > { %v555_v16 = vmax.f32 %v490_v14, 0.0  ;;  %v494_v18 = vadd.f32 %v493_v15, %v1749_v30 }
 0x111   : > { %v495_v0 = vpop.f32.mrf.mxu0 }
 0x112   : > { %v496_v19 = vadd.f32 %v495_v0, %v1752_v31  ;;  %754 = vmatprep.mubr.f32.mxu1 %v555_v16  ;;  %v556_v22 = vmax.f32 %v494_v18, 0.0 }
 0x113   : > { %v499_v20 = vpop.f32.mrf.mxu0  ;;  %755 = vmatmul.mubr.f32.vlgmr.msra.gmra.mxu1 %v554_v17 }
 0x114   : > { %v557_v21 = vmax.f32 %v496_v19, 0.0  ;;  %v500_v23 = vadd.f32 %v499_v20, %v1749_v30 }
 0x115   : > { %v501_v24 = vpop.f32.mrf.mxu0 }
 0x116   : > { %v502_v28 = vadd.f32 %v501_v24, %v1752_v31  ;;  %760 = vmatprep.mubr.f32.mxu1 %v557_v21  ;;  %v558_v34 = vmax.f32 %v500_v23, 0.0 }
 0x117   : > { %v505_v32 = vpop.f32.mrf.mxu0  ;;  %761 = vmatmul.mubr.f32.gmra.mxu1 %v556_v22 }
 0x118   : > { %v559_v33 = vmax.f32 %v502_v28, 0.0  ;;  %v506_v35 = vadd.f32 %v505_v32, %v1749_v30 }
 0x119   : > { %v507_v36 = vpop.f32.mrf.mxu0 }
 0x11a   : > { %v508_v37 = vadd.f32 %v507_v36, %v1752_v31  ;;  %766 = vmatprep.mubr.f32.mxu1 %v559_v33  ;;  %v560_v40 = vmax.f32 %v506_v35, 0.0 }
 0x11b   : > { %v511_v38 = vpop.f32.mrf.mxu0  ;;  %767 = vmatmul.mubr.f32.gmra.mxu1 %v558_v34 }
 0x11c   : > { %v561_v39 = vmax.f32 %v508_v37, 0.0  ;;  %v512_v41 = vadd.f32 %v511_v38, %v1749_v30 }
 0x11d   : > { %v513_v42 = vpop.f32.mrf.mxu0 }
 0x11e   : > { %v514_v43 = vadd.f32 %v513_v42, %v1752_v31  ;;  %772 = vmatprep.mubr.f32.mxu1 %v561_v39  ;;  %v562_v46 = vmax.f32 %v512_v41, 0.0 }
 0x11f   : > { %v517_v44 = vpop.f32.mrf.mxu0  ;;  %773 = vmatmul.mubr.f32.gmra.mxu1 %v560_v40 }
 0x120   : > { %v563_v45 = vmax.f32 %v514_v43, 0.0  ;;  %v518_v47 = vadd.f32 %v517_v44, %v1749_v30 }
 0x121   : > { %v519_v48 = vpop.f32.mrf.mxu0 }
 0x122   : > { %v520_v49 = vadd.f32 %v519_v48, %v1752_v31  ;;  %778 = vmatprep.mubr.f32.mxu1 %v563_v45  ;;  %v564_v52 = vmax.f32 %v518_v47, 0.0 }
 0x123   : > { %v523_v50 = vpop.f32.mrf.mxu0  ;;  %779 = vmatmul.mubr.f32.gmra.mxu1 %v562_v46 }
 0x124   : > { %v565_v51 = vmax.f32 %v520_v49, 0.0  ;;  %v524_v53 = vadd.f32 %v523_v50, %v1749_v30 }
 0x125   : > { %v525_v54 = vpop.f32.mrf.mxu0 }
 0x126   : > { %v526_v55 = vadd.f32 %v525_v54, %v1752_v31  ;;  %784 = vmatprep.mubr.f32.mxu1 %v565_v51  ;;  %v566_v58 = vmax.f32 %v524_v53, 0.0 }
 0x127   : > { %v529_v56 = vpop.f32.mrf.mxu0  ;;  %785 = vmatmul.mubr.f32.gmra.mxu1 %v564_v52 }
 0x128   : > { %v567_v57 = vmax.f32 %v526_v55, 0.0  ;;  %v530_v59 = vadd.f32 %v529_v56, %v1749_v30 }
 0x129   : > { %v531_v60 = vpop.f32.mrf.mxu0 }
 0x12a   : > { %v532_v61 = vadd.f32 %v531_v60, %v1752_v31  ;;  %790 = vmatprep.mubr.f32.mxu1 %v567_v57  ;;  %v568_v1 = vmax.f32 %v530_v59, 0.0 }
 0x12b   : > { %v535_v62 = vpop.f32.mrf.mxu0  ;;  %791 = vmatmul.mubr.f32.gmra.mxu1 %v566_v58 }
 0x12c   : > { %v569_v63 = vmax.f32 %v532_v61, 0.0  ;;  %v536_v2 = vadd.f32 %v535_v62, %v1749_v30 }
 0x12d   : > { %v537_v3 = vpop.f32.mrf.mxu0 }
 0x12e   : > { %v538_v4 = vadd.f32 %v537_v3, %v1752_v31  ;;  %796 = vmatprep.mubr.f32.mxu1 %v569_v63  ;;  %v570_v6 = vmax.f32 %v536_v2, 0.0  ;;  %v841_v31 = vld [vmem:[%s1978_s5] sm:$0x3] }
 0x12f   : > { %797 = vmatmul.mubr.f32.gmra.mxu1 %v568_v1  ;;  %v1801_v14 = vrot.slane %v841_v31, %v1740_v27  ;;  %v1804_v15 = vrot.slane %v841_v31, %v1746_v29 }
 0x130   : > { %v571_v5 = vmax.f32 %v538_v4, 0.0 }
 0x132   : > { %802 = vmatprep.mubr.f32.mxu1 %v571_v5 }
 0x133   : > { %803 = vmatmul.mubr.f32.gmra.mxu1 %v570_v6 }
 0x1b7   : > { %v714_v30 = vpop.f32.mrf.mxu0 }
 0x1b8   : > { %v715_v10 = vadd.f32 %v714_v30, %v1790_v8 }
 0x1b9   : > { %v716_v11 = vpop.f32.mrf.mxu0 }
 0x1ba   : > { %v809_v12 = vmax.f32 %v715_v10, 0.0  ;;  %v717_v13 = vadd.f32 %v716_v11, %v1793_v9 }
 0x1bb   : > { %v720_v16 = vpop.f32.mrf.mxu0 }
 0x1bc   : > { %v810_v17 = vmax.f32 %v717_v13, 0.0  ;;  %v721_v18 = vadd.f32 %v720_v16, %v1790_v8  ;;  %v853_v21 = vmul.f32 %v1801_v14, %v809_v12 }
 0x1bd   : > { %v722_v0 = vpop.f32.mrf.mxu0 }
 0x1be   : > { %v811_v19 = vmax.f32 %v721_v18, 0.0  ;;  %v723_v20 = vadd.f32 %v722_v0, %v1793_v9  ;;  %v854_v22 = vmul.f32 %v1804_v15, %v810_v17 }
 0x1bf   : > { %v726_v23 = vpop.f32.mrf.mxu0 }
 0x1c0   : > { %v812_v24 = vmax.f32 %v723_v20, 0.0  ;;  %v727_v27 = vadd.f32 %v726_v23, %v1790_v8  ;;  %v885_v28 = vadd.f32 %v854_v22, %v853_v21  ;;  %v855_v29 = vmul.f32 %v1801_v14, %v811_v19 }
 0x1c1   : > { %v728_v32 = vpop.f32.mrf.mxu0 }
 0x1c2   : > { %v856_v33 = vmul.f32 %v1804_v15, %v812_v24  ;;  %v813_v34 = vmax.f32 %v727_v27, 0.0  ;;  %v729_v35 = vadd.f32 %v728_v32, %v1793_v9  ;;  %886 = vadd.xlane.f32.xlu0 %v885_v28 }
 0x1c3   : > { %v732_v36 = vpop.f32.mrf.mxu0 }
 0x1c4   : > { %v814_v37 = vmax.f32 %v729_v35, 0.0  ;;  %v733_v38 = vadd.f32 %v732_v36, %v1790_v8  ;;  %v888_v39 = vadd.f32 %v856_v33, %v855_v29  ;;  %v857_v43 = vmul.f32 %v1801_v14, %v813_v34 }
 0x1c5   : > { %v734_v40 = vpop.f32.mrf.mxu0 }
 0x1c6   : > { %v815_v41 = vmax.f32 %v733_v38, 0.0  ;;  %v735_v42 = vadd.f32 %v734_v40, %v1793_v9  ;;  %889 = vadd.xlane.f32.xlu0 %v888_v39  ;;  %v858_v44 = vmul.f32 %v1804_v15, %v814_v37 }
 0x1c7   : > { %v738_v45 = vpop.f32.mrf.mxu0 }
 0x1c8   : > { %v816_v46 = vmax.f32 %v735_v42, 0.0  ;;  %v739_v47 = vadd.f32 %v738_v45, %v1790_v8  ;;  %v891_v48 = vadd.f32 %v858_v44, %v857_v43  ;;  %v859_v50 = vmul.f32 %v1801_v14, %v815_v41 }
 0x1c9   : > { %v740_v49 = vpop.f32.mrf.mxu0 }
 0x1ca   : > { %v860_v51 = vmul.f32 %v1804_v15, %v816_v46  ;;  %v817_v52 = vmax.f32 %v739_v47, 0.0  ;;  %v741_v53 = vadd.f32 %v740_v49, %v1793_v9  ;;  %892 = vadd.xlane.f32.xlu1 %v891_v48 }
 0x1cb   : > { %v744_v54 = vpop.f32.mrf.mxu0 }
 0x1cc   : > { %v818_v55 = vmax.f32 %v741_v53, 0.0  ;;  %v745_v56 = vadd.f32 %v744_v54, %v1790_v8  ;;  %v894_v57 = vadd.f32 %v860_v51, %v859_v50  ;;  %v861_v59 = vmul.f32 %v1801_v14, %v817_v52 }
 0x1cd   : > { %v746_v58 = vpop.f32.mrf.mxu0 }
 0x1ce   : > { %v862_v60 = vmul.f32 %v1804_v15, %v818_v55  ;;  %v819_v61 = vmax.f32 %v745_v56, 0.0  ;;  %v747_v62 = vadd.f32 %v746_v58, %v1793_v9  ;;  %895 = vadd.xlane.f32.xlu1 %v894_v57 }
 0x1cf   : > { %v750_v63 = vpop.f32.mrf.mxu0 }
 0x1d0   : > { %v820_v1 = vmax.f32 %v747_v62, 0.0  ;;  %v751_v2 = vadd.f32 %v750_v63, %v1790_v8  ;;  %v897_v3 = vadd.f32 %v862_v60, %v861_v59  ;;  %v863_v5 = vmul.f32 %v1801_v14, %v819_v61 }
 0x1d1   : > { %v752_v4 = vpop.f32.mrf.mxu0 }
 0x1d2   : > { %v864_v6 = vmul.f32 %v1804_v15, %v820_v1  ;;  %v821_v7 = vmax.f32 %v751_v2, 0.0  ;;  %v753_v30 = vadd.f32 %v752_v4, %v1793_v9  ;;  %898 = vadd.xlane.f32.xlu0 %v897_v3 }
 0x1d3   : > { %v756_v31 = vpop.f32.mrf.mxu1 }
 0x1d4   : > { %v822_v10 = vmax.f32 %v753_v30, 0.0  ;;  %v757_v11 = vadd.f32 %v756_v31, %v1790_v8  ;;  %v900_v12 = vadd.f32 %v864_v6, %v863_v5  ;;  %v865_v16 = vmul.f32 %v1801_v14, %v821_v7 }
 0x1d5   : > { %v758_v13 = vpop.f32.mrf.mxu1 }
 0x1d6   : > { %v866_v17 = vmul.f32 %v1804_v15, %v822_v10  ;;  %v823_v18 = vmax.f32 %v757_v11, 0.0  ;;  %v759_v0 = vadd.f32 %v758_v13, %v1793_v9  ;;  %901 = vadd.xlane.f32.xlu1 %v900_v12 }
 0x1d7   : > { %v762_v19 = vpop.f32.mrf.mxu1 }
 0x1d8   : > { %v824_v20 = vmax.f32 %v759_v0, 0.0  ;;  %v763_v21 = vadd.f32 %v762_v19, %v1790_v8  ;;  %v903_v22 = vadd.f32 %v866_v17, %v865_v16  ;;  %v867_v24 = vmul.f32 %v1801_v14, %v823_v18 }
 0x1d9   : > { %v764_v23 = vpop.f32.mrf.mxu1 }
 0x1da   : > { %v868_v27 = vmul.f32 %v1804_v15, %v824_v20  ;;  %v825_v28 = vmax.f32 %v763_v21, 0.0  ;;  %v765_v32 = vadd.f32 %v764_v23, %v1793_v9  ;;  %904 = vadd.xlane.f32.xlu0 %v903_v22 }
 0x1db   : > { %v768_v29 = vpop.f32.mrf.mxu1 }
 0x1dc   : > { %v826_v33 = vmax.f32 %v765_v32, 0.0  ;;  %v769_v34 = vadd.f32 %v768_v29, %v1790_v8  ;;  %v906_v35 = vadd.f32 %v868_v27, %v867_v24  ;;  %v869_v37 = vmul.f32 %v1801_v14, %v825_v28 }
 0x1dd   : > { %v770_v36 = vpop.f32.mrf.mxu1 }
 0x1de   : > { %v870_v38 = vmul.f32 %v1804_v15, %v826_v33  ;;  %v827_v39 = vmax.f32 %v769_v34, 0.0  ;;  %v771_v40 = vadd.f32 %v770_v36, %v1793_v9  ;;  %907 = vadd.xlane.f32.xlu1 %v906_v35 }
 0x1df   : > { %v774_v41 = vpop.f32.mrf.mxu1 }
 0x1e0   : > { %v828_v42 = vmax.f32 %v771_v40, 0.0  ;;  %v775_v43 = vadd.f32 %v774_v41, %v1790_v8  ;;  %v909_v44 = vadd.f32 %v870_v38, %v869_v37  ;;  %v871_v46 = vmul.f32 %v1801_v14, %v827_v39 }
 0x1e1   : > { %v776_v45 = vpop.f32.mrf.mxu1 }
 0x1e2   : > { %v872_v47 = vmul.f32 %v1804_v15, %v828_v42  ;;  %v829_v48 = vmax.f32 %v775_v43, 0.0  ;;  %v777_v49 = vadd.f32 %v776_v45, %v1793_v9  ;;  %910 = vadd.xlane.f32.xlu0 %v909_v44  ;;  %v1869_v45 = vand.u32 127, %v320_v25 }
 0x1e3   : > { %v780_v50 = vpop.f32.mrf.mxu1 }
 0x1e4   : > { %v830_v51 = vmax.f32 %v777_v49, 0.0  ;;  %v781_v52 = vadd.f32 %v780_v50, %v1790_v8  ;;  %v912_v53 = vadd.f32 %v872_v47, %v871_v46  ;;  %v873_v55 = vmul.f32 %v1801_v14, %v829_v48 }
 0x1e5   : > { %v782_v54 = vpop.f32.mrf.mxu1  ;;  %v973_v47 = vadd.s32 4294967288, %v1869_v45  ;;  %v980_v48 = vadd.s32 4294967280, %v1869_v45  ;;  %v1875_v50 = vstv %s933_s19 }
 0x1e6   : > { %v874_v56 = vmul.f32 %v1804_v15, %v830_v51  ;;  %v831_v57 = vmax.f32 %v781_v52, 0.0  ;;  %v783_v58 = vadd.f32 %v782_v54, %v1793_v9  ;;  %913 = vadd.xlane.f32.xlu1 %v912_v53  ;;  %v971_v51 = vsub.s32 %v1869_v45, %v1737_v26 }
 0x1e7   : > { %v786_v59 = vpop.f32.mrf.mxu1  ;;  %v1001_v52 = vadd.s32 4294967256, %v1869_v45  ;;  %v976_v53 = vsub.s32 %v973_v47, %v1737_v26  ;;  %v983_v54 = vsub.s32 %v980_v48, %v1737_v26 }
 0x1e8   : > { %v832_v60 = vmax.f32 %v783_v58, 0.0  ;;  %v787_v61 = vadd.f32 %v786_v59, %v1790_v8  ;;  %v915_v62 = vadd.f32 %v874_v56, %v873_v55  ;;  %v875_v1 = vmul.f32 %v1801_v14, %v831_v57 }
 0x1e9   : > { %v788_v63 = vpop.f32.mrf.mxu1  ;;  %v1008_v55 = vadd.s32 4294967248, %v1869_v45  ;;  %v1015_v57 = vadd.s32 4294967240, %v1869_v45 }
 0x1ea   : > { %v876_v2 = vmul.f32 %v1804_v15, %v832_v60  ;;  %v833_v3 = vmax.f32 %v787_v61, 0.0  ;;  %v789_v4 = vadd.f32 %v788_v63, %v1793_v9  ;;  %916 = vadd.xlane.f32.xlu0 %v915_v62  ;;  %v1022_v60 = vadd.s32 4294967232, %v1869_v45 }
 0x1eb   : > { %v792_v5 = vpop.f32.mrf.mxu1  ;;  %v1004_v63 = vsub.s32 %v1001_v52, %v1737_v26 }
 0x1ec   : > { %v834_v6 = vmax.f32 %v789_v4, 0.0  ;;  %v793_v7 = vadd.f32 %v792_v5, %v1790_v8  ;;  %v918_v30 = vadd.f32 %v876_v2, %v875_v1  ;;  %v877_v10 = vmul.f32 %v1801_v14, %v833_v3 }
 0x1ed   : > { %v794_v31 = vpop.f32.mrf.mxu1  ;;  %v1029_v1 = vadd.s32 4294967224, %v1869_v45  ;;  %v1011_v5 = vsub.s32 %v1008_v55, %v1737_v26 }
 0x1ee   : > { %v878_v11 = vmul.f32 %v1804_v15, %v834_v6  ;;  %v835_v12 = vmax.f32 %v793_v7, 0.0  ;;  %v795_v13 = vadd.f32 %v794_v31, %v1793_v9  ;;  %919 = vadd.xlane.f32.xlu1 %v918_v30  ;;  %v1018_v7 = vsub.s32 %v1015_v57, %v1737_v26 }
 0x1ef   : > { %v798_v16 = vpop.f32.mrf.mxu1  ;;  %v1036_v30 = vadd.s32 4294967216, %v1869_v45 }
 0x1f0   : > { %v836_v17 = vmax.f32 %v795_v13, 0.0  ;;  %v799_v18 = vadd.f32 %v798_v16, %v1790_v8  ;;  %v921_v0 = vadd.f32 %v878_v11, %v877_v10  ;;  %v879_v20 = vmul.f32 %v1801_v14, %v835_v12 }
 0x1f1   : > { %v800_v19 = vpop.f32.mrf.mxu1  ;;  %v1025_v11 = vsub.s32 %v1022_v60, %v1737_v26  ;;  %v1043_v13 = vadd.s32 4294967208, %v1869_v45 }
 0x1f2   : > { %v880_v21 = vmul.f32 %v1804_v15, %v836_v17  ;;  %v837_v22 = vmax.f32 %v799_v18, 0.0  ;;  %v801_v23 = vadd.f32 %v800_v19, %v1793_v9  ;;  %922 = vadd.xlane.f32.xlu0 %v921_v0  ;;  %v1032_v18 = vsub.s32 %v1029_v1, %v1737_v26 }
 0x1f3   : > { %v804_v24 = vpop.f32.mrf.mxu1 }
 0x1f4   : > { %v838_v27 = vmax.f32 %v801_v23, 0.0  ;;  %v805_v28 = vadd.f32 %v804_v24, %v1790_v8  ;;  %v924_v32 = vadd.f32 %v880_v21, %v879_v20  ;;  %v881_v33 = vmul.f32 %v1801_v14, %v837_v22 }
 0x1f5   : > { %v806_v29 = vpop.f32.mrf.mxu1  ;;  %v1050_v22 = vadd.s32 4294967200, %v1869_v45 }
 0x1f6   : > { %v882_v34 = vmul.f32 %v1804_v15, %v838_v27  ;;  %v839_v35 = vmax.f32 %v805_v28, 0.0  ;;  %v807_v36 = vadd.f32 %v806_v29, %v1793_v9  ;;  %925 = vadd.xlane.f32.xlu1 %v924_v32  ;;  %v1039_v27 = vsub.s32 %v1036_v30, %v1737_v26 }
 0x1f7   : > { %v1057_v28 = vadd.s32 4294967192, %v1869_v45 }
 0x1f8   : > { %v840_v37 = vmax.f32 %v807_v36, 0.0  ;;  %v927_v38 = vadd.f32 %v882_v34, %v881_v33  ;;  %v883_v39 = vmul.f32 %v1801_v14, %v839_v35  ;;  %v987_v14 = vadd.s32 4294967272, %v1869_v45 }
 0x1f9   : > { %v1046_v34 = vsub.s32 %v1043_v13, %v1737_v26  ;;  %v1060_v47 = vsub.s32 %v1057_v28, %v1737_v26 }
 0x1fa   : > { %v884_v40 = vmul.f32 %v1804_v15, %v840_v37  ;;  %928 = vadd.xlane.f32.xlu0 %v927_v38  ;;  %v994_v15 = vadd.s32 4294967264, %v1869_v45  ;;  %v990_v56 = vsub.s32 %v987_v14, %v1737_v26 }
 0x1fc   : > { %v930_v41 = vadd.f32 %v884_v40, %v883_v39  ;;  %v997_v59 = vsub.s32 %v994_v15, %v1737_v26  ;;  %v1064_v40 = vadd.s32 4294967184, %v1869_v45 }
 0x1fe   : > { %931 = vadd.xlane.f32.xlu1 %v930_v41 }
 0x24b   : > { %v887_v8 = vpop.xlane.xlu0 %886 }
 0x24c   : > { %v935_v3 = vadd.f32 %v1875_v50, %v887_v8 }
 0x24e   : > { %v972_v19 = vrot.slane %v935_v3, %v971_v51 }
 0x24f   : > { %v890_v43 = vpop.xlane.xlu0 %889 }
 0x250   : > { %v936_v58 = vadd.f32 %v1875_v50, %v890_v43  ;;  %v1053_v43 = vsub.s32 %v1050_v22, %v1737_v26 }
 0x252   : > { %v977_v31 = vrot.slane %v936_v58, %v976_v53 }
 0x253   : > { %v893_v42 = vpop.xlane.xlu1 %892 }
 0x254   : > { %v937_v62 = vadd.f32 %v1875_v50, %v893_v42  ;;  %v979_v32 = vsel %vm978_vm1, %v977_v31, %v972_v19 }
 0x256   : > { %v984_v16 = vrot.slane %v937_v62, %v983_v54 }
 0x257   : > { %v896_v44 = vpop.xlane.xlu1 %895 }
 0x258   : > { %v938_v4 = vadd.f32 %v1875_v50, %v896_v44  ;;  %v986_v36 = vsel %vm985_vm2, %v984_v16, %v979_v32 }
 0x25a   : > { %v991_v20 = vrot.slane %v938_v4, %v990_v56 }
 0x25b   : > { %v899_v46 = vpop.xlane.xlu0 %898 }
 0x25c   : > { %v939_v6 = vadd.f32 %v1875_v50, %v899_v46  ;;  %v993_v41 = vsel %vm992_vm3, %v991_v20, %v986_v36 }
 0x25e   : > { %v998_v23 = vrot.slane %v939_v6, %v997_v59 }
 0x25f   : > { %v902_v9 = vpop.xlane.xlu1 %901 }
 0x260   : > { %v940_v10 = vadd.f32 %v1875_v50, %v902_v9  ;;  %v1000_v44 = vsel %vm999_vm4, %v998_v23, %v993_v41 }
 0x262   : > { %v1005_v29 = vrot.slane %v940_v10, %v1004_v63 }
 0x263   : > { %v905_v49 = vpop.xlane.xlu0 %904 }
 0x264   : > { %v941_v17 = vadd.f32 %v1875_v50, %v905_v49  ;;  %v1007_v48 = vsel %vm1006_vm5, %v1005_v29, %v1000_v44  ;;  %v1071_v49 = vadd.s32 4294967176, %v1869_v45 }
 0x266   : > { %v1012_v37 = vrot.slane %v941_v17, %v1011_v5  ;;  %v1074_v60 = vsub.s32 %v1071_v49, %v1737_v26 }
 0x267   : > { %v908_v25 = vpop.xlane.xlu1 %907 }
 0x268   : > { %v942_v21 = vadd.f32 %v1875_v50, %v908_v25  ;;  %v1014_v51 = vsel %vm1013_vm6, %v1012_v37, %v1007_v48  ;;  %v1067_v25 = vsub.s32 %v1064_v40, %v1737_v26 }
 0x26a   : > { %v1019_v8 = vrot.slane %v942_v21, %v1018_v7 }
 0x26b   : > { %v911_v61 = vpop.xlane.xlu0 %910 }
 0x26c   : > { %v943_v24 = vadd.f32 %v1875_v50, %v911_v61  ;;  %v1021_v54 = vsel %vm1020_vm7, %v1019_v8, %v1014_v51 }
 0x26e   : > { %v1026_v46 = vrot.slane %v943_v24, %v1025_v11 }
 0x26f   : > { %v914_v2 = vpop.xlane.xlu1 %913 }
 0x270   : > { %v944_v33 = vadd.f32 %v1875_v50, %v914_v2  ;;  %v1028_v57 = vsel %vm1027_vm8, %v1026_v46, %v1021_v54 }
 0x272   : > { %v1033_v14 = vrot.slane %v944_v33, %v1032_v18 }
 0x273   : > { %v917_v12 = vpop.xlane.xlu0 %916 }
 0x274   : > { %v945_v38 = vadd.f32 %v1875_v50, %v917_v12  ;;  %v1035_v45 = vsel %vm1034_vm9, %v1033_v14, %v1028_v57 }
 0x276   : > { %v1040_v52 = vrot.slane %v945_v38, %v1039_v27 }
 0x277   : > { %v920_v0 = vpop.xlane.xlu1 %919 }
 0x278   : > { %v946_v42 = vadd.f32 %v1875_v50, %v920_v0  ;;  %v1042_v61 = vsel %vm1041_vm10, %v1040_v52, %v1035_v45 }
 0x27a   : > { %v1047_v55 = vrot.slane %v946_v42, %v1046_v34 }
 0x27b   : > { %v923_v35 = vpop.xlane.xlu0 %922 }
 0x27c   : > { %v947_v9 = vadd.f32 %v1875_v50, %v923_v35  ;;  %v1049_v1 = vsel %vm1048_vm11, %v1047_v55, %v1042_v61 }
 0x27e   : > { %v1054_v58 = vrot.slane %v947_v9, %v1053_v43 }
 0x27f   : > { %v926_v39 = vpop.xlane.xlu1 %925 }
 0x280   : > { %v948_v15 = vadd.f32 %v1875_v50, %v926_v39  ;;  %v1056_v3 = vsel %vm1055_vm12, %v1054_v58, %v1049_v1 }
 0x282   : > { %v1061_v59 = vrot.slane %v948_v15, %v1060_v47 }
 0x283   : > { %v929_v53 = vpop.xlane.xlu0 %928 }
 0x284   : > { %v949_v56 = vadd.f32 %v1875_v50, %v929_v53  ;;  %v1063_v4 = vsel %vm1062_vm13, %v1061_v59, %v1056_v3 }
 0x286   : > { %v1068_v62 = vrot.slane %v949_v56, %v1067_v25 }
 0x287   : > { %v932_v63 = vpop.xlane.xlu1 %931 }
 0x288   : > { %v950_v2 = vadd.f32 %v1875_v50, %v932_v63  ;;  %v1070_v6 = vsel %vm1069_vm14, %v1068_v62, %v1063_v4 }
 0x28a   : > { %v1075_v5 = vrot.slane %v950_v2, %v1074_v60 }
 0x28c   : > { %v1077_v26 = vsel %vm1076_vm15, %v1075_v5, %v1070_v6 }
 0x28d   : > { %1079 = vst [vmem:[%s287_s21] sm:$0x1] %v1077_v26 }
 0x28e   : > { %1343 = shalt.err (!%p1340_p0)
}
 0x28f   : > { %s1344_s22 = scalar_lea.hbm %s1936_s30, 16  ;;  %s1348_s18 = scalar_lea.hbm %s1980_s7, 32 }
 0x290   : > { %p1345_p1 = scmp.ne.s32.totalorder %s1936_s30, %s1344_s22  ;;  %p1349_p4 = scmp.lt.s32.totalorder %s1936_s30, %s1980_s7 }
 0x291   : > { %p1350_p7 = scmp.lt.s32.totalorder %s1348_s18, %s1344_s22 }
 0x292   : > { %p1346_p2 = pnand %p1345_p1, %p1482_p5 }
 0x293   : > { %p1351_p6 = por %p1350_p7, %p1349_p4 }
 0x294   : > { %p1347_p3 = pneg %p1346_p2 }
 0x296   : > { %p1352_p8 = pnand %p1351_p6, %p1347_p3 }
 0x298   : > { %1355 = shalt.err (!%p1352_p8)
}
 0x299   : > { %1255 = dma.vmem_to_hbm [thread:$0]  (%p1482_p5), %s1094_s24, 16, %s1936_s30, %s1081_s9  }
 0x29a PF: > { %p1267_p9 = scmp.ge.s32.totalorder %s1394_s29, 2  ;;  %s1105_s21 = sand.u32 1, %s1382_s26  }
 0x29b   : > { %p1984_p10 = scmp.ne.s32.totalorder %s1982_s13, 0  ;;  %s1106_s25 = scalar_lea.sflag [#allocation5], %s1105_s21 }
 0x29d   : > { %p1262_p11 = pnand %p1267_p9, %p1984_p10 }
 0x29f   : > { %p1263_p12 = pneg %p1262_p11 }
 0x2a1   : > { %1377 = dma.done.wait (%p1263_p12), %s1106_s25, 16  }
 0x2a2   : > { %1379 = vsyncadd (%p1263_p12), %s1106_s25, 4294967280  ;;  %p19_p13 = scmp.ge.s32.totalorder %s1469_s8, 4   ;;  %s1985_s26 = smov %s1386_s27 }
 0x2a3   : > { %s1986_s27 = smov %s1390_s28  ;;  %s1987_s28 = smov %s1480_s11 }
 0x2a4   : > { %s1988_s29 = smov %s1469_s8  ;;  %21 = sbr.rel (!%p19_p13) target bundleno = 6 (0x6), region = 88 }
 0x2a9   :  { %1110 = vsyncpa [#allocation4], 1 }
 0x2aa   :  { %1112 = vsyncpa [#allocation4 + $0x1], 1 }
 0x2ab   :  { %1113 = vsyncpa [#allocation5], 1 }
 0x2ac   :  { %1115 = vsyncpa [#allocation5 + $0x1], 1 }

// kernel: tpu_custom_call.1
= control target key start
LH: loop header
LB: loop body
LE: loop exit
PB: predicated region body
PF: predicated region fallthrough
CT: control target
= control target key end

     0   :  { %s1973_s0 = inlined_call_operand.vmem [shape: f32[256,32], index: 0, kind: input, shape index: {}]   ;;  %s1974_s1 = inlined_call_operand.vmem [shape: f32[32,256], index: 1, kind: input, shape index: {}]   ;;  %s1975_s2 = inlined_call_operand.vmem [shape: f32[1,256], index: 2, kind: input, shape index: {}]   ;;  %s1976_s3 = inlined_call_operand.hbm [shape: f32[256,256], index: 3, kind: input, shape index: {}]   ;;  %s1977_s4 = inlined_call_operand.vmem [shape: f32[1,256], index: 4, kind: input, shape index: {}]   ;;  %s1978_s5 = inlined_call_operand.vmem [shape: f32[1,256], index: 5, kind: input, shape index: {}]   ;;  %s1979_s6 = inlined_call_operand.<no memory space> [shape: f32[1], index: 6, kind: input, shape index: {}]   ;;  %s1980_s7 = inlined_call_operand.hbm [shape: f32[1,256], index: 7, kind: output, shape index: {}]  }
   0x1   :  { %12 = sst [smem:[#allocation2]] %s1979_s6 }
   0x2   :  { %13 = vsyncpa [#allocation4], 0 }
   0x3   :  { %14 = vsyncpa [#allocation5], 0 }
   0x4   :  { %16 = vsyncpa [#allocation5 + $0x1], 0  ;;  %s1444_s26 = smov 0   ;;  %s1446_s27 = smov 0  }
   0x5   :  { %s1448_s28 = smov 0   ;;  %s1450_s29 = smov 0  }
   0x6 LB: > { %s1465_s6 = sadd.s32 4294967295, %s1394_s29   ;;  %s1160_s30 = sadd.s32 4294967294, %s1394_s29   ;;  %s1394_s29 = sphi %s1450_s29, %s1988_s29   ;;  %s1390_s28 = sphi %s1448_s28, %s1987_s28   ;;  %s1386_s27 = sphi %s1446_s27, %s1986_s27   ;;  %s1382_s26 = sphi %s1444_s26, %s1985_s26  }
   0x7   : > { %s1469_s8 = sadd.s32 1, %s1394_s29   ;;  %s181_s9 = sadd.s32 1, %s1390_s28 }
   0x8   : > { %s178_s10 = ssub.s32 %s1394_s29, %s1469_s8  ;;  %p191_p0 = scmp.ne.s32.totalorder %s1390_s28, %s1386_s27 }
   0x9   : > { %p179_p1 = scmp.eq.s32.totalorder %s178_s10, 0  ;;  %p192_p2 = scmp.eq.s32.totalorder %s1465_s6, 1 }
   0xa   : > { %p197_p3 = scmp.ne.s32.totalorder %s1386_s27, %s1382_s26  ;;  %p198_p4 = scmp.eq.s32.totalorder %s1160_s30, 1 }
   0xb   : > { %s1480_s11 = scalar_select %p179_p1, %s1390_s28, %s181_s9  }
   0xc   : > { %p1482_p5 = por %p192_p2, %p191_p0  ;;  %p1486_p6 = por %p198_p4, %p197_p3 }
   0xd   : > { %p1161_p7 = scmp.ge.s32.totalorder %s1394_s29, 1  ;;  %p205_p8 = scmp.lt.s32.totalorder %s1394_s29, 3 }
   0xe   : > { %s1982_s13 = scalar_select %p1486_p6, 1, 0 }
   0xf   : > { %p1265_p9 = scmp.eq.s32.totalorder %s1465_s6, 0  ;;  %p1493_p10 = pnand %p1161_p7, %p205_p8 }
  0x10   : > { %s1396_s15 = smov [#allocation3]  }
  0x11   : > { %s223_s16 = sshll.u32 %s1396_s15, 4  ;;  %p1257_p11 = pneg %p1493_p10  ;;  %s224_s16 = int_to_ptr.vmem [resolvable:$true] %s223_s16 }
  0x12   : > { %s1315_s17 = scalar_lea.vmem %s224_s16, 8192  ;;  %p1323_p3 = scmp.lt.s32.totalorder %s224_s16, %s224_s16 }
  0x13   : > { %p1258_p12 = pnand %p1265_p9, %p1257_p11  ;;  %p1316_p0 = scmp.ne.s32.totalorder %s224_s16, %s1315_s17 }
  0x14   : > { %p1324_p4 = scmp.lt.s32.totalorder %s1315_s17, %s1315_s17 }
  0x15   : > { %p1306_p13 = pneg %p1258_p12 }
  0x16   : > { %p1325_p6 = por %p1324_p4, %p1323_p3 }
  0x17   : > { %p1318_p1 = pnand %p1316_p0, %p1306_p13 }
  0x19   : > { %p1319_p2 = pneg %p1318_p1 }
  0x1b   : > { %p1326_p7 = pnand %p1325_p6, %p1319_p2 }
  0x1d   : > { %1329 = shalt.err (!%p1326_p7)
}
  0x1e   : > { %s1397_s18 = smov 256   ;;  %s1398_s19 = smov 16  }
  0x1f   : > { %1260 = dma.hbm_to_vmem [thread:$0]  (!%p1258_p12), %s1976_s3, 8192, %s224_s16, [#allocation4], %s1397_s18, %s1397_s18, %s1398_s19  }
  0x20   : > { %257 = sbr.rel (%p1493_p10) target bundleno = 666 (0x29a), region = 48 }
  0x25   : > { %1373 = dma.done.wait (%p1265_p9), [#allocation4], 8192  }
  0x26   : > { %1375 = vsyncadd (%p1265_p9), [#allocation4], 4294959104  ;;  %s1511_s22 = sshll.u32 %s1465_s6, 4  ;;  %v1399_v0 = vmov 0.0   ;;  %v317_v1 = vld [vmem:[%s1974_s1 + $0x38] sm:$0xff]  ;;  %v316_v2 = vld [vmem:[%s1974_s1 + $0x30] sm:$0xff] }
  0x27   : > { %443 = vmatprep.mubr.f32.mxu0 %v1399_v0  ;;  %p289_p6 = scmp.lt.s32.totalorder %s1511_s22, 31  ;;  %v315_v3 = vld [vmem:[%s1974_s1 + $0x28] sm:$0xff]  ;;  %403 = vmatprep.subr.mxu0 %v317_v1  ;;  %v314_v4 = vld [vmem:[%s1974_s1 + $0x20] sm:$0xff]  ;;  %v313_v5 = vld [vmem:[%s1974_s1 + $0x18] sm:$0xff]  ;;  %vm330_vm0 = vcmask 261120   ;;  %s933_s19 = sld [smem:[#allocation2]] }
  0x28   : > { %404 = vmatpush1.msra.mxu0 %v316_v2  ;;  %v312_v6 = vld [vmem:[%s1974_s1 + $0x10] sm:$0xff]  ;;  %v311_v7 = vld [vmem:[%s1974_s1 + $0x8] sm:$0xff]  ;;  %v310_v8 = vld [vmem:[%s1974_s1] sm:$0xff]  ;;  %vm978_vm1 = vcmask 130112   ;;  %vm985_vm2 = vcmask 195712   ;;  %vm992_vm3 = vcmask 261312   ;;  %s1936_s30 = scalar_lea.hbm %s1980_s7, %s1511_s22 }
  0x29   : > { %s290_s23 = scalar_select %p289_p6, %s1511_s22, 31  ;;  %405 = vmatprep.subr.mxu0 %v315_v3  ;;  %v603_v10 = vld [vmem:[#allocation3 + $0xf8] sm:$0xff]  ;;  %v602_v11 = vld [vmem:[#allocation3 + $0xf0] sm:$0xff]  ;;  %v601_v12 = vld [vmem:[#allocation3 + $0xe8] sm:$0xff]  ;;  %vm999_vm4 = vcmask 326912   ;;  %vm1006_vm5 = vcmask 392512  }
  0x2a   : > { %406 = vmatpush1.msra.mxu0 %v314_v4  ;;  %v600_v13 = vld [vmem:[#allocation3 + $0xe0] sm:$0xff]  ;;  %v599_v15 = vld [vmem:[#allocation3 + $0xd8] sm:$0xff]  ;;  %v598_v16 = vld [vmem:[#allocation3 + $0xd0] sm:$0xff]  ;;  %1187 = vmatprep.subr.mxu1 %v603_v10  ;;  %vm1013_vm6 = vcmask 458112   ;;  %vm1020_vm7 = vcmask 523712   ;;  %vm1027_vm8 = vcmask 589312  }
  0x2b   : > { %s1167_s6 = sshll.u32 %s290_s23, 3  ;;  %407 = vmatprep.subr.mxu0 %v313_v5  ;;  %v597_v17 = vld [vmem:[#allocation3 + $0xc8] sm:$0xff]  ;;  %1219 = vmatpush1.msra.mxu1 %v602_v11  ;;  %v596_v18 = vld [vmem:[#allocation3 + $0xc0] sm:$0xff]  ;;  %v595_v20 = vld [vmem:[#allocation3 + $0xb8] sm:$0xff]  ;;  %s286_s20 = sand.u32 1, %s1386_s27   ;;  %vm1034_vm9 = vcmask 654912  }
  0x2c   : > { %s1537_s25 = scalar_lea.vmem %s1973_s0, %s1167_s6  ;;  %408 = vmatpush1.msra.mxu0 %v312_v6  ;;  %v594_v21 = vld [vmem:[#allocation3 + $0xb0] sm:$0xff]  ;;  %1188 = vmatprep.subr.mxu1 %v601_v12  ;;  %v593_v22 = vld [vmem:[#allocation3 + $0xa8] sm:$0xff]  ;;  %v592_v23 = vld [vmem:[#allocation3 + $0xa0] sm:$0xff]  ;;  %vm1041_vm10 = vcmask 720512   ;;  %vm1048_vm11 = vcmask 786112   ;;  %vm1055_vm12 = vcmask 851712  }
  0x2d   : > { %v294_v9 = vld [vmem:[%s1537_s25] sm:$0xff]  ;;  %409 = vmatprep.subr.mxu0 %v311_v7  ;;  %v295_v14 = vld [vmem:[%s1537_s25 + $0x8] sm:$0xff]  ;;  %v296_v19 = vld [vmem:[%s1537_s25 + $0x10] sm:$0xff]  ;;  %1220 = vmatpush1.msra.mxu1 %v600_v13  ;;  %vm1062_vm13 = vcmask 917312   ;;  %vm1069_vm14 = vcmask 982912   ;;  %s287_s21 = scalar_lea.vmem [#allocation6], %s286_s20 }
  0x2e   : > { %410 = vmatpush1.msra.mxu0 %v310_v8  ;;  %v297_v24 = vld [vmem:[%s1537_s25 + $0x18] sm:$0xff]  ;;  %v590_v26 = vld [vmem:[#allocation3 + $0x90] sm:$0xff]  ;;  %1189 = vmatprep.subr.mxu1 %v599_v15  ;;  %v589_v27 = vld [vmem:[#allocation3 + $0x88] sm:$0xff]  ;;  %s1093_s24 = sshll.u32 %s287_s21, 4  ;;  %vm1076_vm15 = vcmask 1048512   ;;  %s1081_s9 = scalar_lea.sflag [#allocation5], %s286_s20  ;;  %s1094_s24 = int_to_ptr.vmem [resolvable:$true] %s1093_s24 }
  0x2f   : > { %1168 = vmatmul.mubr.msk.f32.vlgmr.msra.gmra.mxu0 %vm330_vm0, %v294_v9  ;;  %648 = vmatprep.subr.mxu0 %v603_v10  ;;  %v591_v25 = vld [vmem:[#allocation3 + $0x98] sm:$0xff]  ;;  %v588_v28 = vld [vmem:[#allocation3 + $0x80] sm:$0xff]  ;;  %v1560_v31 = vld [vmem:[#allocation3 + $0x70] sm:$0xff]  ;;  %s1330_s10 = scalar_lea.vmem %s1094_s24, 16  ;;  %s1400_s14 = smov [#allocation6]  }
  0x30   : > { %449 = vmatprep.mubr.f32.mxu0 %v1399_v0  ;;  %649 = vmatpush1.msra.mxu0 %v602_v11  ;;  %v298_v29 = vld [vmem:[%s1537_s25 + $0x20] sm:$0xff]  ;;  %v1558_v30 = vld [vmem:[#allocation3 + $0x78] sm:$0xff]  ;;  %v1562_v32 = vld [vmem:[#allocation3 + $0x68] sm:$0xff]  ;;  %p1331_p8 = scmp.ne.s32.totalorder %s1094_s24, %s1330_s10  ;;  %s1334_s6 = sshll.u32 %s1400_s14, 4  ;;  %s1335_s6 = int_to_ptr.vmem [resolvable:$false] %s1334_s6 }
  0x31   : > { %650 = vmatprep.subr.mxu0 %v601_v12  ;;  %1221 = vmatpush1.msra.mxu1 %v598_v16  ;;  %v1566_v33 = vld [vmem:[#allocation3 + $0x60] sm:$0xff]  ;;  %v299_v34 = vld [vmem:[%s1537_s25 + $0x28] sm:$0xff]  ;;  %v1571_v35 = vld [vmem:[#allocation3 + $0x58] sm:$0xff]  ;;  %s1336_s15 = scalar_lea.vmem %s1335_s6, 32  ;;  %p1337_p11 = scmp.lt.s32.totalorder %s1094_s24, %s1335_s6 }
  0x32   : > { %651 = vmatpush1.msra.mxu0 %v600_v13  ;;  %1190 = vmatprep.subr.mxu1 %v597_v17  ;;  %v1574_v36 = vld [vmem:[#allocation3 + $0x50] sm:$0xff]  ;;  %v1577_v37 = vld [vmem:[#allocation3 + $0x48] sm:$0xff]  ;;  %v1581_v38 = vld [vmem:[#allocation3 + $0x40] sm:$0xff]  ;;  %p1332_p9 = pnand %p1331_p8, %p1482_p5  ;;  %p1338_p12 = scmp.lt.s32.totalorder %s1336_s15, %s1330_s10 }
  0x33   : > { %1169 = vmatmul.mubr.msk.f32.gmra.mxu0 %vm330_vm0, %v295_v14  ;;  %652 = vmatprep.subr.mxu0 %v599_v15  ;;  %v300_v39 = vld [vmem:[%s1537_s25 + $0x30] sm:$0xff]  ;;  %v1586_v40 = vld [vmem:[#allocation3 + $0x38] sm:$0xff]  ;;  %v1592_v42 = vld [vmem:[#allocation3 + $0x28] sm:$0xff] }
  0x34   : > { %455 = vmatprep.mubr.f32.mxu0 %v1399_v0  ;;  %653 = vmatpush1.msra.mxu0 %v598_v16  ;;  %v1589_v41 = vld [vmem:[#allocation3 + $0x30] sm:$0xff]  ;;  %v1596_v43 = vld [vmem:[#allocation3 + $0x20] sm:$0xff]  ;;  %v301_v44 = vld [vmem:[%s1537_s25 + $0x38] sm:$0xff]  ;;  %p1333_p10 = pneg %p1332_p9  ;;  %p1339_p13 = por %p1338_p12, %p1337_p11 }
  0x35   : > { %654 = vmatprep.subr.mxu0 %v597_v17  ;;  %1222 = vmatpush1.msra.mxu1 %v596_v18  ;;  %v1601_v45 = vld [vmem:[#allocation3 + $0x18] sm:$0xff]  ;;  %v1604_v46 = vld [vmem:[#allocation3 + $0x10] sm:$0xff]  ;;  %v1607_v47 = vld [vmem:[#allocation3 + $0x8] sm:$0xff] }
  0x36   : > { %655 = vmatpush1.msra.mxu0 %v596_v18  ;;  %1191 = vmatprep.subr.mxu1 %v595_v20  ;;  %v1611_v48 = vld [vmem:[#allocation3] sm:$0xff]  ;;  %v1616_v50 = vld [vmem:[#allocation3 + $0x1f8] sm:$0xff]  ;;  %v1619_v51 = vld [vmem:[#allocation3 + $0x1f0] sm:$0xff]  ;;  %p1340_p0 = pnand %p1339_p13, %p1333_p10 }
  0x37   : > { %1170 = vmatmul.mubr.msk.f32.gmra.mxu0 %vm330_vm0, %v296_v19  ;;  %656 = vmatprep.subr.mxu0 %v595_v20  ;;  %v302_v49 = vld [vmem:[%s1537_s25 + $0x40] sm:$0xff]  ;;  %v1622_v52 = vld [vmem:[#allocation3 + $0x1e8] sm:$0xff]  ;;  %v1631_v55 = vld [vmem:[#allocation3 + $0x1d8] sm:$0xff] }
  0x38   : > { %461 = vmatprep.mubr.f32.mxu0 %v1399_v0  ;;  %657 = vmatpush1.msra.mxu0 %v594_v21  ;;  %v1626_v53 = vld [vmem:[#allocation3 + $0x1e0] sm:$0xff]  ;;  %v303_v54 = vld [vmem:[%s1537_s25 + $0x48] sm:$0xff]  ;;  %v1634_v56 = vld [vmem:[#allocation3 + $0x1d0] sm:$0xff] }
  0x39   : > { %658 = vmatprep.subr.mxu0 %v593_v22  ;;  %1223 = vmatpush1.msra.mxu1 %v594_v21  ;;  %v1638_v57 = vld [vmem:[#allocation3 + $0x1c8] sm:$0xff]  ;;  %v1643_v58 = vld [vmem:[#allocation3 + $0x1c0] sm:$0xff]  ;;  %v304_v59 = vld [vmem:[%s1537_s25 + $0x50] sm:$0xff] }
  0x3a   : > { %659 = vmatpush1.msra.mxu0 %v592_v23  ;;  %1192 = vmatprep.subr.mxu1 %v593_v22  ;;  %v1648_v60 = vld [vmem:[#allocation3 + $0x1b8] sm:$0xff]  ;;  %v1651_v61 = vld [vmem:[#allocation3 + $0x1b0] sm:$0xff]  ;;  %v1655_v62 = vld [vmem:[#allocation3 + $0x1a8] sm:$0xff] }
  0x3b   : > { %1171 = vmatmul.mubr.msk.f32.gmra.mxu0 %vm330_vm0, %v297_v24  ;;  %660 = vmatprep.subr.mxu0 %v591_v25  ;;  %v1660_v63 = vld [vmem:[#allocation3 + $0x1a0] sm:$0xff]  ;;  %v305_v1 = vld [vmem:[%s1537_s25 + $0x58] sm:$0xff]  ;;  %v1668_v3 = vld [vmem:[#allocation3 + $0x190] sm:$0xff] }
  0x3c   : > { %467 = vmatprep.mubr.f32.mxu0 %v1399_v0  ;;  %661 = vmatpush1.msra.mxu0 %v590_v26  ;;  %v1665_v2 = vld [vmem:[#allocation3 + $0x198] sm:$0xff]  ;;  %v1672_v4 = vld [vmem:[#allocation3 + $0x188] sm:$0xff]  ;;  %v1677_v5 = vld [vmem:[#allocation3 + $0x180] sm:$0xff] }
  0x3d   : > { %662 = vmatprep.subr.mxu0 %v589_v27  ;;  %1224 = vmatpush1.msra.mxu1 %v592_v23  ;;  %v306_v6 = vld [vmem:[%s1537_s25 + $0x60] sm:$0xff]  ;;  %v1682_v7 = vld [vmem:[#allocation3 + $0x178] sm:$0xff]  ;;  %v1685_v8 = vld [vmem:[#allocation3 + $0x170] sm:$0xff] }
  0x3e   : > { %663 = vmatpush1.msra.mxu0 %v588_v28  ;;  %1193 = vmatprep.subr.mxu1 %v591_v25  ;;  %v1689_v9 = vld [vmem:[#allocation3 + $0x168] sm:$0xff]  ;;  %v1694_v10 = vld [vmem:[#allocation3 + $0x160] sm:$0xff]  ;;  %v615_v12 = vld [vmem:[#allocation3 + $0x158] sm:$0xff]  ;;  %v320_v25 = vlaneseq }
  0x3f   : > { %1172 = vmatmul.mubr.msk.f32.gmra.mxu0 %vm330_vm0, %v298_v29  ;;  %664 = vmatprep.subr.mxu0 %v1558_v30  ;;  %v307_v11 = vld [vmem:[%s1537_s25 + $0x68] sm:$0xff]  ;;  %v614_v13 = vld [vmem:[#allocation3 + $0x150] sm:$0xff]  ;;  %v612_v15 = vld [vmem:[#allocation3 + $0x140] sm:$0xff] }
  0x40   : > { %473 = vmatprep.mubr.f32.mxu0 %v1399_v0  ;;  %665 = vmatpush1.msra.mxu0 %v1560_v31  ;;  %v613_v14 = vld [vmem:[#allocation3 + $0x148] sm:$0xff]  ;;  %v308_v16 = vld [vmem:[%s1537_s25 + $0x70] sm:$0xff]  ;;  %v309_v17 = vld [vmem:[%s1537_s25 + $0x78] sm:$0xff] }
  0x41   : > { %666 = vmatprep.subr.mxu0 %v1562_v32  ;;  %1225 = vmatpush1.msra.mxu1 %v590_v26  ;;  %v611_v18 = vld [vmem:[#allocation3 + $0x138] sm:$0xff]  ;;  %v609_v19 = vld [vmem:[#allocation3 + $0x128] sm:$0xff]  ;;  %v608_v20 = vld [vmem:[#allocation3 + $0x120] sm:$0xff]  ;;  %v1737_v26 = vshrl.u32 %v320_v25, 7 }
  0x42   : > { %667 = vmatpush1.msra.mxu0 %v1566_v33  ;;  %1194 = vmatprep.subr.mxu1 %v589_v27  ;;  %v607_v21 = vld [vmem:[#allocation3 + $0x118] sm:$0xff]  ;;  %v606_v22 = vld [vmem:[#allocation3 + $0x110] sm:$0xff]  ;;  %v605_v23 = vld [vmem:[#allocation3 + $0x108] sm:$0xff] }
  0x43   : > { %1173 = vmatmul.mubr.msk.f32.gmra.mxu0 %vm330_vm0, %v299_v34  ;;  %668 = vmatprep.subr.mxu0 %v1571_v35  ;;  %v604_v24 = vld [vmem:[#allocation3 + $0x100] sm:$0xff]  ;;  %v1740_v27 = vsub.s32 0, %v1737_v26  ;;  %v1746_v29 = vsub.s32 1, %v1737_v26 }
  0x44   : > { %479 = vmatprep.mubr.f32.mxu0 %v1399_v0  ;;  %669 = vmatpush1.msra.mxu0 %v1574_v36 }
  0x45   : > { %670 = vmatprep.subr.mxu0 %v1577_v37  ;;  %1226 = vmatpush1.msra.mxu1 %v588_v28  ;;  %v318_v28 = vld [vmem:[%s1975_s2] sm:$0x3] }
  0x46   : > { %671 = vmatpush1.msra.mxu0 %v1581_v38  ;;  %1195 = vmatprep.subr.mxu1 %v1558_v30  ;;  %v1749_v30 = vrot.slane %v318_v28, %v1740_v27 }
  0x47   : > { %1174 = vmatmul.mubr.msk.f32.gmra.mxu0 %vm330_vm0, %v300_v39  ;;  %672 = vmatprep.subr.mxu0 %v1586_v40 }
  0x48   : > { %485 = vmatprep.mubr.f32.mxu0 %v1399_v0  ;;  %673 = vmatpush1.msra.mxu0 %v1589_v41 }
  0x49   : > { %674 = vmatprep.subr.mxu0 %v1592_v42  ;;  %1227 = vmatpush1.msra.mxu1 %v1560_v31  ;;  %v1752_v31 = vrot.slane %v318_v28, %v1746_v29 }
  0x4a   : > { %675 = vmatpush1.msra.mxu0 %v1596_v43  ;;  %1196 = vmatprep.subr.mxu1 %v1562_v32 }
  0x4b   : > { %1175 = vmatmul.mubr.msk.f32.gmra.mxu0 %vm330_vm0, %v301_v44  ;;  %676 = vmatprep.subr.mxu0 %v1601_v45 }
  0x4c   : > { %491 = vmatprep.mubr.f32.mxu0 %v1399_v0  ;;  %677 = vmatpush1.msra.mxu0 %v1604_v46 }
  0x4d   : > { %678 = vmatprep.subr.mxu0 %v1607_v47  ;;  %1228 = vmatpush1.msra.mxu1 %v1566_v33 }
  0x4e   : > { %679 = vmatpush1.msra.mxu0 %v1611_v48  ;;  %1197 = vmatprep.subr.mxu1 %v1571_v35 }
  0x4f   : > { %1176 = vmatmul.mubr.msk.f32.gmra.mxu0 %vm330_vm0, %v302_v49  ;;  %680 = vmatprep.subr.mxu0 %v1616_v50 }
  0x50   : > { %497 = vmatprep.mubr.f32.mxu0 %v1399_v0  ;;  %681 = vmatpush2.msra.mxu0 %v1619_v51 }
  0x51   : > { %682 = vmatprep.subr.mxu0 %v1622_v52  ;;  %1229 = vmatpush1.msra.mxu1 %v1574_v36 }
  0x52   : > { %683 = vmatpush2.msra.mxu0 %v1626_v53  ;;  %1198 = vmatprep.subr.mxu1 %v1577_v37 }
  0x53   : > { %1177 = vmatmul.mubr.msk.f32.gmra.mxu0 %vm330_vm0, %v303_v54  ;;  %684 = vmatprep.subr.mxu0 %v1631_v55 }
  0x54   : > { %503 = vmatprep.mubr.f32.mxu0 %v1399_v0  ;;  %685 = vmatpush2.msra.mxu0 %v1634_v56 }
  0x55   : > { %686 = vmatprep.subr.mxu0 %v1638_v57  ;;  %1230 = vmatpush1.msra.mxu1 %v1581_v38 }
  0x56   : > { %687 = vmatpush2.msra.mxu0 %v1643_v58  ;;  %1199 = vmatprep.subr.mxu1 %v1586_v40 }
  0x57   : > { %1178 = vmatmul.mubr.msk.f32.gmra.mxu0 %vm330_vm0, %v304_v59  ;;  %688 = vmatprep.subr.mxu0 %v1648_v60 }
  0x58   : > { %509 = vmatprep.mubr.f32.mxu0 %v1399_v0  ;;  %689 = vmatpush2.msra.mxu0 %v1651_v61 }
  0x59   : > { %690 = vmatprep.subr.mxu0 %v1655_v62  ;;  %1231 = vmatpush1.msra.mxu1 %v1589_v41 }
  0x5a   : > { %691 = vmatpush2.msra.mxu0 %v1660_v63  ;;  %1200 = vmatprep.subr.mxu1 %v1592_v42 }
  0x5b   : > { %1179 = vmatmul.mubr.msk.f32.gmra.mxu0 %vm330_vm0, %v305_v1  ;;  %692 = vmatprep.subr.mxu0 %v1665_v2 }
  0x5c   : > { %515 = vmatprep.mubr.f32.mxu0 %v1399_v0  ;;  %693 = vmatpush2.msra.mxu0 %v1668_v3 }
  0x5d   : > { %694 = vmatprep.subr.mxu0 %v1672_v4  ;;  %1232 = vmatpush1.msra.mxu1 %v1596_v43 }
  0x5e   : > { %695 = vmatpush2.msra.mxu0 %v1677_v5  ;;  %1201 = vmatprep.subr.mxu1 %v1601_v45 }
  0x5f   : > { %1180 = vmatmul.mubr.msk.f32.gmra.mxu0 %vm330_vm0, %v306_v6  ;;  %696 = vmatprep.subr.mxu0 %v1682_v7 }
  0x60   : > { %521 = vmatprep.mubr.f32.mxu0 %v1399_v0  ;;  %697 = vmatpush2.msra.mxu0 %v1685_v8 }
  0x61   : > { %698 = vmatprep.subr.mxu0 %v1689_v9  ;;  %1233 = vmatpush1.msra.mxu1 %v1604_v46 }
  0x62   : > { %699 = vmatpush2.msra.mxu0 %v1694_v10  ;;  %1202 = vmatprep.subr.mxu1 %v1607_v47 }
  0x63   : > { %1181 = vmatmul.mubr.msk.f32.gmra.mxu0 %vm330_vm0, %v307_v11  ;;  %700 = vmatprep.subr.mxu0 %v615_v12 }
  0x64   : > { %527 = vmatprep.mubr.f32.mxu0 %v1399_v0  ;;  %701 = vmatpush2.msra.mxu0 %v614_v13 }
  0x65   : > { %702 = vmatprep.subr.mxu0 %v613_v14  ;;  %1234 = vmatpush1.msra.mxu1 %v1611_v48 }
  0x66   : > { %703 = vmatpush2.msra.mxu0 %v612_v15  ;;  %1203 = vmatprep.subr.mxu1 %v1616_v50 }
  0x67   : > { %1182 = vmatmul.mubr.msk.f32.gmra.mxu0 %vm330_vm0, %v308_v16  ;;  %1235 = vmatpush2.msra.mxu1 %v1619_v51 }
  0x68   : > { %533 = vmatprep.mubr.f32.mxu0 %v1399_v0  ;;  %1204 = vmatprep.subr.mxu1 %v1622_v52  ;;  %v610_v0 = vld [vmem:[#allocation3 + $0x130] sm:$0xff] }
  0x69   : > { %1236 = vmatpush2.msra.mxu1 %v1626_v53  ;;  %704 = vmatprep.subr.mxu0 %v611_v18 }
  0x6a   : > { %1205 = vmatprep.subr.mxu1 %v1631_v55  ;;  %705 = vmatpush2.msra.mxu0 %v610_v0 }
  0x6b   : > { %1183 = vmatmul.mubr.msk.f32.gmra.mxu0 %vm330_vm0, %v309_v17  ;;  %1237 = vmatpush2.msra.mxu1 %v1634_v56 }
  0x6c   : > { %706 = vmatprep.subr.mxu0 %v609_v19  ;;  %1206 = vmatprep.subr.mxu1 %v1638_v57 }
  0x6d   : > { %707 = vmatpush2.msra.mxu0 %v608_v20  ;;  %1238 = vmatpush2.msra.mxu1 %v1643_v58 }
  0x6e   : > { %708 = vmatprep.subr.mxu0 %v607_v21  ;;  %1207 = vmatprep.subr.mxu1 %v1648_v60 }
  0x6f   : > { %709 = vmatpush2.msra.mxu0 %v606_v22  ;;  %1239 = vmatpush2.msra.mxu1 %v1651_v61 }
  0x70   : > { %710 = vmatprep.subr.mxu0 %v605_v23  ;;  %1208 = vmatprep.subr.mxu1 %v1655_v62 }
  0x71   : > { %711 = vmatpush2.msra.mxu0 %v604_v24  ;;  %1240 = vmatpush2.msra.mxu1 %v1660_v63 }
  0x72   : > { %1209 = vmatprep.subr.mxu1 %v1665_v2 }
  0x73   : > { %1241 = vmatpush2.msra.mxu1 %v1668_v3 }
  0x74   : > { %1210 = vmatprep.subr.mxu1 %v1672_v4 }
  0x75   : > { %1242 = vmatpush2.msra.mxu1 %v1677_v5 }
  0x76   : > { %1211 = vmatprep.subr.mxu1 %v1682_v7 }
  0x77   : > { %1243 = vmatpush2.msra.mxu1 %v1685_v8 }
  0x78   : > { %1212 = vmatprep.subr.mxu1 %v1689_v9 }
  0x79   : > { %1244 = vmatpush2.msra.mxu1 %v1694_v10 }
  0x7a   : > { %1213 = vmatprep.subr.mxu1 %v615_v12 }
  0x7b   : > { %1245 = vmatpush2.msra.mxu1 %v614_v13 }
  0x7c   : > { %1214 = vmatprep.subr.mxu1 %v613_v14 }
  0x7d   : > { %1246 = vmatpush2.msra.mxu1 %v612_v15 }
  0x7e   : > { %1215 = vmatprep.subr.mxu1 %v611_v18 }
  0x7f   : > { %1247 = vmatpush2.msra.mxu1 %v610_v0 }
  0x80   : > { %1216 = vmatprep.subr.mxu1 %v609_v19 }
  0x81   : > { %1248 = vmatpush2.msra.mxu1 %v608_v20 }
  0x82   : > { %1217 = vmatprep.subr.mxu1 %v607_v21 }
  0x83   : > { %1249 = vmatpush2.msra.mxu1 %v606_v22 }
  0x84   : > { %1218 = vmatprep.subr.mxu1 %v605_v23 }
  0x85   : > { %1250 = vmatpush2.msra.mxu1 %v604_v24 }
  0xef   : > { %v445_v32 = vpop.f32.mrf.mxu0 }
  0xf0   : > { %v446_v33 = vadd.f32 %v445_v32, %v1749_v30 }
  0xf1   : > { %v447_v34 = vpop.f32.mrf.mxu0 }
  0xf2   : > { %v448_v35 = vadd.f32 %v447_v34, %v1752_v31  ;;  %v540_v38 = vmax.f32 %v446_v33, 0.0 }
  0xf3   : > { %v451_v36 = vpop.f32.mrf.mxu0 }
  0xf4   : > { %v541_v37 = vmax.f32 %v448_v35, 0.0  ;;  %v452_v39 = vadd.f32 %v451_v36, %v1749_v30 }
  0xf5   : > { %v453_v40 = vpop.f32.mrf.mxu0 }
  0xf6   : > { %v454_v41 = vadd.f32 %v453_v40, %v1752_v31  ;;  %712 = vmatprep.mubr.f32.mxu0 %v541_v37  ;;  %v542_v44 = vmax.f32 %v452_v39, 0.0 }
  0xf7   : > { %v457_v42 = vpop.f32.mrf.mxu0  ;;  %713 = vmatmul.mubr.f32.vlgmr.msra.gmra.mxu0 %v540_v38 }
  0xf8   : > { %v543_v43 = vmax.f32 %v454_v41, 0.0  ;;  %v458_v45 = vadd.f32 %v457_v42, %v1749_v30 }
  0xf9   : > { %v459_v46 = vpop.f32.mrf.mxu0 }
  0xfa   : > { %v460_v47 = vadd.f32 %v459_v46, %v1752_v31  ;;  %718 = vmatprep.mubr.f32.mxu0 %v543_v43  ;;  %v544_v50 = vmax.f32 %v458_v45, 0.0 }
  0xfb   : > { %v463_v48 = vpop.f32.mrf.mxu0  ;;  %719 = vmatmul.mubr.f32.gmra.mxu0 %v542_v44 }
  0xfc   : > { %v545_v49 = vmax.f32 %v460_v47, 0.0  ;;  %v464_v51 = vadd.f32 %v463_v48, %v1749_v30 }
  0xfd   : > { %v465_v52 = vpop.f32.mrf.mxu0 }
  0xfe   : > { %v466_v53 = vadd.f32 %v465_v52, %v1752_v31  ;;  %724 = vmatprep.mubr.f32.mxu0 %v545_v49  ;;  %v546_v56 = vmax.f32 %v464_v51, 0.0 }
  0xff   : > { %v469_v54 = vpop.f32.mrf.mxu0  ;;  %725 = vmatmul.mubr.f32.gmra.mxu0 %v544_v50 }
 0x100   : > { %v547_v55 = vmax.f32 %v466_v53, 0.0  ;;  %v470_v57 = vadd.f32 %v469_v54, %v1749_v30 }
 0x101   : > { %v471_v58 = vpop.f32.mrf.mxu0 }
 0x102   : > { %v472_v59 = vadd.f32 %v471_v58, %v1752_v31  ;;  %730 = vmatprep.mubr.f32.mxu0 %v547_v55  ;;  %v548_v62 = vmax.f32 %v470_v57, 0.0 }
 0x103   : > { %v475_v60 = vpop.f32.mrf.mxu0  ;;  %731 = vmatmul.mubr.f32.gmra.mxu0 %v546_v56 }
 0x104   : > { %v549_v61 = vmax.f32 %v472_v59, 0.0  ;;  %v476_v63 = vadd.f32 %v475_v60, %v1749_v30 }
 0x105   : > { %v477_v1 = vpop.f32.mrf.mxu0 }
 0x106   : > { %v478_v2 = vadd.f32 %v477_v1, %v1752_v31  ;;  %736 = vmatprep.mubr.f32.mxu0 %v549_v61  ;;  %v550_v5 = vmax.f32 %v476_v63, 0.0 }
 0x107   : > { %v481_v3 = vpop.f32.mrf.mxu0  ;;  %737 = vmatmul.mubr.f32.gmra.mxu0 %v548_v62 }
 0x108   : > { %v551_v4 = vmax.f32 %v478_v2, 0.0  ;;  %v482_v6 = vadd.f32 %v481_v3, %v1749_v30 }
 0x109   : > { %v483_v7 = vpop.f32.mrf.mxu0 }
 0x10a   : > { %v484_v8 = vadd.f32 %v483_v7, %v1752_v31  ;;  %742 = vmatprep.mubr.f32.mxu0 %v551_v4  ;;  %v552_v11 = vmax.f32 %v482_v6, 0.0  ;;  %v636_v7 = vld [vmem:[%s1977_s4] sm:$0x3] }
 0x10b   : > { %v487_v9 = vpop.f32.mrf.mxu0  ;;  %743 = vmatmul.mubr.f32.gmra.mxu0 %v550_v5 }
 0x10c   : > { %v553_v10 = vmax.f32 %v484_v8, 0.0  ;;  %v488_v12 = vadd.f32 %v487_v9, %v1749_v30  ;;  %v1790_v8 = vrot.slane %v636_v7, %v1740_v27  ;;  %v1793_v9 = vrot.slane %v636_v7, %v1746_v29 }
 0x10d   : > { %v489_v13 = vpop.f32.mrf.mxu0 }
 0x10e   : > { %748 = vmatprep.mubr.f32.mxu0 %v553_v10  ;;  %v490_v14 = vadd.f32 %v489_v13, %v1752_v31  ;;  %v554_v17 = vmax.f32 %v488_v12, 0.0 }
 0x10f   : > { %v493_v15 = vpop.f32.mrf.mxu0  ;;  %749 = vmatmul.mubr.f32.gmra.mxu0 %v552_v11 }
 0x110   : > { %v555_v16 = vmax.f32 %v490_v14, 0.0  ;;  %v494_v18 = vadd.f32 %v493_v15, %v1749_v30 }
 0x111   : > { %v495_v0 = vpop.f32.mrf.mxu0 }
 0x112   : > { %v496_v19 = vadd.f32 %v495_v0, %v1752_v31  ;;  %754 = vmatprep.mubr.f32.mxu1 %v555_v16  ;;  %v556_v22 = vmax.f32 %v494_v18, 0.0 }
 0x113   : > { %v499_v20 = vpop.f32.mrf.mxu0  ;;  %755 = vmatmul.mubr.f32.vlgmr.msra.gmra.mxu1 %v554_v17 }
 0x114   : > { %v557_v21 = vmax.f32 %v496_v19, 0.0  ;;  %v500_v23 = vadd.f32 %v499_v20, %v1749_v30 }
 0x115   : > { %v501_v24 = vpop.f32.mrf.mxu0 }
 0x116   : > { %v502_v28 = vadd.f32 %v501_v24, %v1752_v31  ;;  %760 = vmatprep.mubr.f32.mxu1 %v557_v21  ;;  %v558_v34 = vmax.f32 %v500_v23, 0.0 }
 0x117   : > { %v505_v32 = vpop.f32.mrf.mxu0  ;;  %761 = vmatmul.mubr.f32.gmra.mxu1 %v556_v22 }
 0x118   : > { %v559_v33 = vmax.f32 %v502_v28, 0.0  ;;  %v506_v35 = vadd.f32 %v505_v32, %v1749_v30 }
 0x119   : > { %v507_v36 = vpop.f32.mrf.mxu0 }
 0x11a   : > { %v508_v37 = vadd.f32 %v507_v36, %v1752_v31  ;;  %766 = vmatprep.mubr.f32.mxu1 %v559_v33  ;;  %v560_v40 = vmax.f32 %v506_v35, 0.0 }
 0x11b   : > { %v511_v38 = vpop.f32.mrf.mxu0  ;;  %767 = vmatmul.mubr.f32.gmra.mxu1 %v558_v34 }
 0x11c   : > { %v561_v39 = vmax.f32 %v508_v37, 0.0  ;;  %v512_v41 = vadd.f32 %v511_v38, %v1749_v30 }
 0x11d   : > { %v513_v42 = vpop.f32.mrf.mxu0 }
 0x11e   : > { %v514_v43 = vadd.f32 %v513_v42, %v1752_v31  ;;  %772 = vmatprep.mubr.f32.mxu1 %v561_v39  ;;  %v562_v46 = vmax.f32 %v512_v41, 0.0 }
 0x11f   : > { %v517_v44 = vpop.f32.mrf.mxu0  ;;  %773 = vmatmul.mubr.f32.gmra.mxu1 %v560_v40 }
 0x120   : > { %v563_v45 = vmax.f32 %v514_v43, 0.0  ;;  %v518_v47 = vadd.f32 %v517_v44, %v1749_v30 }
 0x121   : > { %v519_v48 = vpop.f32.mrf.mxu0 }
 0x122   : > { %v520_v49 = vadd.f32 %v519_v48, %v1752_v31  ;;  %778 = vmatprep.mubr.f32.mxu1 %v563_v45  ;;  %v564_v52 = vmax.f32 %v518_v47, 0.0 }
 0x123   : > { %v523_v50 = vpop.f32.mrf.mxu0  ;;  %779 = vmatmul.mubr.f32.gmra.mxu1 %v562_v46 }
 0x124   : > { %v565_v51 = vmax.f32 %v520_v49, 0.0  ;;  %v524_v53 = vadd.f32 %v523_v50, %v1749_v30 }
 0x125   : > { %v525_v54 = vpop.f32.mrf.mxu0 }
 0x126   : > { %v526_v55 = vadd.f32 %v525_v54, %v1752_v31  ;;  %784 = vmatprep.mubr.f32.mxu1 %v565_v51  ;;  %v566_v58 = vmax.f32 %v524_v53, 0.0 }
 0x127   : > { %v529_v56 = vpop.f32.mrf.mxu0  ;;  %785 = vmatmul.mubr.f32.gmra.mxu1 %v564_v52 }
 0x128   : > { %v567_v57 = vmax.f32 %v526_v55, 0.0  ;;  %v530_v59 = vadd.f32 %v529_v56, %v1749_v30 }
 0x129   : > { %v531_v60 = vpop.f32.mrf.mxu0 }
 0x12a   : > { %v532_v61 = vadd.f32 %v531_v60, %v1752_v31  ;;  %790 = vmatprep.mubr.f32.mxu1 %v567_v57  ;;  %v568_v1 = vmax.f32 %v530_v59, 0.0 }
 0x12b   : > { %v535_v62 = vpop.f32.mrf.mxu0  ;;  %791 = vmatmul.mubr.f32.gmra.mxu1 %v566_v58 }
 0x12c   : > { %v569_v63 = vmax.f32 %v532_v61, 0.0  ;;  %v536_v2 = vadd.f32 %v535_v62, %v1749_v30 }
 0x12d   : > { %v537_v3 = vpop.f32.mrf.mxu0 }
 0x12e   : > { %v538_v4 = vadd.f32 %v537_v3, %v1752_v31  ;;  %796 = vmatprep.mubr.f32.mxu1 %v569_v63  ;;  %v570_v6 = vmax.f32 %v536_v2, 0.0  ;;  %v841_v31 = vld [vmem:[%s1978_s5] sm:$0x3] }
 0x12f   : > { %797 = vmatmul.mubr.f32.gmra.mxu1 %v568_v1  ;;  %v1801_v14 = vrot.slane %v841_v31, %v1740_v27  ;;  %v1804_v15 = vrot.slane %v841_v31, %v1746_v29 }
 0x130   : > { %v571_v5 = vmax.f32 %v538_v4, 0.0 }
 0x132   : > { %802 = vmatprep.mubr.f32.mxu1 %v571_v5 }
 0x133   : > { %803 = vmatmul.mubr.f32.gmra.mxu1 %v570_v6 }
 0x1b7   : > { %v714_v30 = vpop.f32.mrf.mxu0 }
 0x1b8   : > { %v715_v10 = vadd.f32 %v714_v30, %v1790_v8 }
 0x1b9   : > { %v716_v11 = vpop.f32.mrf.mxu0 }
 0x1ba   : > { %v809_v12 = vmax.f32 %v715_v10, 0.0  ;;  %v717_v13 = vadd.f32 %v716_v11, %v1793_v9 }
 0x1bb   : > { %v720_v16 = vpop.f32.mrf.mxu0 }
 0x1bc   : > { %v810_v17 = vmax.f32 %v717_v13, 0.0  ;;  %v721_v18 = vadd.f32 %v720_v16, %v1790_v8  ;;  %v853_v21 = vmul.f32 %v1801_v14, %v809_v12 }
 0x1bd   : > { %v722_v0 = vpop.f32.mrf.mxu0 }
 0x1be   : > { %v811_v19 = vmax.f32 %v721_v18, 0.0  ;;  %v723_v20 = vadd.f32 %v722_v0, %v1793_v9  ;;  %v854_v22 = vmul.f32 %v1804_v15, %v810_v17 }
 0x1bf   : > { %v726_v23 = vpop.f32.mrf.mxu0 }
 0x1c0   : > { %v812_v24 = vmax.f32 %v723_v20, 0.0  ;;  %v727_v27 = vadd.f32 %v726_v23, %v1790_v8  ;;  %v885_v28 = vadd.f32 %v854_v22, %v853_v21  ;;  %v855_v29 = vmul.f32 %v1801_v14, %v811_v19 }
 0x1c1   : > { %v728_v32 = vpop.f32.mrf.mxu0 }
 0x1c2   : > { %v856_v33 = vmul.f32 %v1804_v15, %v812_v24  ;;  %v813_v34 = vmax.f32 %v727_v27, 0.0  ;;  %v729_v35 = vadd.f32 %v728_v32, %v1793_v9  ;;  %886 = vadd.xlane.f32.xlu0 %v885_v28 }
 0x1c3   : > { %v732_v36 = vpop.f32.mrf.mxu0 }
 0x1c4   : > { %v814_v37 = vmax.f32 %v729_v35, 0.0  ;;  %v733_v38 = vadd.f32 %v732_v36, %v1790_v8  ;;  %v888_v39 = vadd.f32 %v856_v33, %v855_v29  ;;  %v857_v43 = vmul.f32 %v1801_v14, %v813_v34 }
 0x1c5   : > { %v734_v40 = vpop.f32.mrf.mxu0 }
 0x1c6   : > { %v815_v41 = vmax.f32 %v733_v38, 0.0  ;;  %v735_v42 = vadd.f32 %v734_v40, %v1793_v9  ;;  %889 = vadd.xlane.f32.xlu0 %v888_v39  ;;  %v858_v44 = vmul.f32 %v1804_v15, %v814_v37 }
 0x1c7   : > { %v738_v45 = vpop.f32.mrf.mxu0 }
 0x1c8   : > { %v816_v46 = vmax.f32 %v735_v42, 0.0  ;;  %v739_v47 = vadd.f32 %v738_v45, %v1790_v8  ;;  %v891_v48 = vadd.f32 %v858_v44, %v857_v43  ;;  %v859_v50 = vmul.f32 %v1801_v14, %v815_v41 }
 0x1c9   : > { %v740_v49 = vpop.f32.mrf.mxu0 }
 0x1ca   : > { %v860_v51 = vmul.f32 %v1804_v15, %v816_v46  ;;  %v817_v52 = vmax.f32 %v739_v47, 0.0  ;;  %v741_v53 = vadd.f32 %v740_v49, %v1793_v9  ;;  %892 = vadd.xlane.f32.xlu1 %v891_v48 }
 0x1cb   : > { %v744_v54 = vpop.f32.mrf.mxu0 }
 0x1cc   : > { %v818_v55 = vmax.f32 %v741_v53, 0.0  ;;  %v745_v56 = vadd.f32 %v744_v54, %v1790_v8  ;;  %v894_v57 = vadd.f32 %v860_v51, %v859_v50  ;;  %v861_v59 = vmul.f32 %v1801_v14, %v817_v52 }
 0x1cd   : > { %v746_v58 = vpop.f32.mrf.mxu0 }
 0x1ce   : > { %v862_v60 = vmul.f32 %v1804_v15, %v818_v55  ;;  %v819_v61 = vmax.f32 %v745_v56, 0.0  ;;  %v747_v62 = vadd.f32 %v746_v58, %v1793_v9  ;;  %895 = vadd.xlane.f32.xlu1 %v894_v57 }
 0x1cf   : > { %v750_v63 = vpop.f32.mrf.mxu0 }
 0x1d0   : > { %v820_v1 = vmax.f32 %v747_v62, 0.0  ;;  %v751_v2 = vadd.f32 %v750_v63, %v1790_v8  ;;  %v897_v3 = vadd.f32 %v862_v60, %v861_v59  ;;  %v863_v5 = vmul.f32 %v1801_v14, %v819_v61 }
 0x1d1   : > { %v752_v4 = vpop.f32.mrf.mxu0 }
 0x1d2   : > { %v864_v6 = vmul.f32 %v1804_v15, %v820_v1  ;;  %v821_v7 = vmax.f32 %v751_v2, 0.0  ;;  %v753_v30 = vadd.f32 %v752_v4, %v1793_v9  ;;  %898 = vadd.xlane.f32.xlu0 %v897_v3 }
 0x1d3   : > { %v756_v31 = vpop.f32.mrf.mxu1 }
 0x1d4   : > { %v822_v10 = vmax.f32 %v753_v30, 0.0  ;;  %v757_v11 = vadd.f32 %v756_v31, %v1790_v8  ;;  %v900_v12 = vadd.f32 %v864_v6, %v863_v5  ;;  %v865_v16 = vmul.f32 %v1801_v14, %v821_v7 }
 0x1d5   : > { %v758_v13 = vpop.f32.mrf.mxu1 }
 0x1d6   : > { %v866_v17 = vmul.f32 %v1804_v15, %v822_v10  ;;  %v823_v18 = vmax.f32 %v757_v11, 0.0  ;;  %v759_v0 = vadd.f32 %v758_v13, %v1793_v9  ;;  %901 = vadd.xlane.f32.xlu1 %v900_v12 }
 0x1d7   : > { %v762_v19 = vpop.f32.mrf.mxu1 }
 0x1d8   : > { %v824_v20 = vmax.f32 %v759_v0, 0.0  ;;  %v763_v21 = vadd.f32 %v762_v19, %v1790_v8  ;;  %v903_v22 = vadd.f32 %v866_v17, %v865_v16  ;;  %v867_v24 = vmul.f32 %v1801_v14, %v823_v18 }
 0x1d9   : > { %v764_v23 = vpop.f32.mrf.mxu1 }
 0x1da   : > { %v868_v27 = vmul.f32 %v1804_v15, %v824_v20  ;;  %v825_v28 = vmax.f32 %v763_v21, 0.0  ;;  %v765_v32 = vadd.f32 %v764_v23, %v1793_v9  ;;  %904 = vadd.xlane.f32.xlu0 %v903_v22 }
 0x1db   : > { %v768_v29 = vpop.f32.mrf.mxu1 }
 0x1dc   : > { %v826_v33 = vmax.f32 %v765_v32, 0.0  ;;  %v769_v34 = vadd.f32 %v768_v29, %v1790_v8  ;;  %v906_v35 = vadd.f32 %v868_v27, %v867_v24  ;;  %v869_v37 = vmul.f32 %v1801_v14, %v825_v28 }
 0x1dd   : > { %v770_v36 = vpop.f32.mrf.mxu1 }
 0x1de   : > { %v870_v38 = vmul.f32 %v1804_v15, %v826_v33  ;;  %v827_v39 = vmax.f32 %v769_v34, 0.0  ;;  %v771_v40 = vadd.f32 %v770_v36, %v1793_v9  ;;  %907 = vadd.xlane.f32.xlu1 %v906_v35 }
 0x1df   : > { %v774_v41 = vpop.f32.mrf.mxu1 }
 0x1e0   : > { %v828_v42 = vmax.f32 %v771_v40, 0.0  ;;  %v775_v43 = vadd.f32 %v774_v41, %v1790_v8  ;;  %v909_v44 = vadd.f32 %v870_v38, %v869_v37  ;;  %v871_v46 = vmul.f32 %v1801_v14, %v827_v39 }
 0x1e1   : > { %v776_v45 = vpop.f32.mrf.mxu1 }
 0x1e2   : > { %v872_v47 = vmul.f32 %v1804_v15, %v828_v42  ;;  %v829_v48 = vmax.f32 %v775_v43, 0.0  ;;  %v777_v49 = vadd.f32 %v776_v45, %v1793_v9  ;;  %910 = vadd.xlane.f32.xlu0 %v909_v44  ;;  %v1869_v45 = vand.u32 127, %v320_v25 }
 0x1e3   : > { %v780_v50 = vpop.f32.mrf.mxu1 }
 0x1e4   : > { %v830_v51 = vmax.f32 %v777_v49, 0.0  ;;  %v781_v52 = vadd.f32 %v780_v50, %v1790_v8  ;;  %v912_v53 = vadd.f32 %v872_v47, %v871_v46  ;;  %v873_v55 = vmul.f32 %v1801_v14, %v829_v48 }
 0x1e5   : > { %v782_v54 = vpop.f32.mrf.mxu1  ;;  %v973_v47 = vadd.s32 4294967288, %v1869_v45  ;;  %v980_v48 = vadd.s32 4294967280, %v1869_v45  ;;  %v1875_v50 = vstv %s933_s19 }
 0x1e6   : > { %v874_v56 = vmul.f32 %v1804_v15, %v830_v51  ;;  %v831_v57 = vmax.f32 %v781_v52, 0.0  ;;  %v783_v58 = vadd.f32 %v782_v54, %v1793_v9  ;;  %913 = vadd.xlane.f32.xlu1 %v912_v53  ;;  %v971_v51 = vsub.s32 %v1869_v45, %v1737_v26 }
 0x1e7   : > { %v786_v59 = vpop.f32.mrf.mxu1  ;;  %v1001_v52 = vadd.s32 4294967256, %v1869_v45  ;;  %v976_v53 = vsub.s32 %v973_v47, %v1737_v26  ;;  %v983_v54 = vsub.s32 %v980_v48, %v1737_v26 }
 0x1e8   : > { %v832_v60 = vmax.f32 %v783_v58, 0.0  ;;  %v787_v61 = vadd.f32 %v786_v59, %v1790_v8  ;;  %v915_v62 = vadd.f32 %v874_v56, %v873_v55  ;;  %v875_v1 = vmul.f32 %v1801_v14, %v831_v57 }
 0x1e9   : > { %v788_v63 = vpop.f32.mrf.mxu1  ;;  %v1008_v55 = vadd.s32 4294967248, %v1869_v45  ;;  %v1015_v57 = vadd.s32 4294967240, %v1869_v45 }
 0x1ea   : > { %v876_v2 = vmul.f32 %v1804_v15, %v832_v60  ;;  %v833_v3 = vmax.f32 %v787_v61, 0.0  ;;  %v789_v4 = vadd.f32 %v788_v63, %v1793_v9  ;;  %916 = vadd.xlane.f32.xlu0 %v915_v62  ;;  %v1022_v60 = vadd.s32 4294967232, %v1869_v45 }
 0x1eb   : > { %v792_v5 = vpop.f32.mrf.mxu1  ;;  %v1004_v63 = vsub.s32 %v1001_v52, %v1737_v26 }
 0x1ec   : > { %v834_v6 = vmax.f32 %v789_v4, 0.0  ;;  %v793_v7 = vadd.f32 %v792_v5, %v1790_v8  ;;  %v918_v30 = vadd.f32 %v876_v2, %v875_v1  ;;  %v877_v10 = vmul.f32 %v1801_v14, %v833_v3 }
 0x1ed   : > { %v794_v31 = vpop.f32.mrf.mxu1  ;;  %v1029_v1 = vadd.s32 4294967224, %v1869_v45  ;;  %v1011_v5 = vsub.s32 %v1008_v55, %v1737_v26 }
 0x1ee   : > { %v878_v11 = vmul.f32 %v1804_v15, %v834_v6  ;;  %v835_v12 = vmax.f32 %v793_v7, 0.0  ;;  %v795_v13 = vadd.f32 %v794_v31, %v1793_v9  ;;  %919 = vadd.xlane.f32.xlu1 %v918_v30  ;;  %v1018_v7 = vsub.s32 %v1015_v57, %v1737_v26 }
 0x1ef   : > { %v798_v16 = vpop.f32.mrf.mxu1  ;;  %v1036_v30 = vadd.s32 4294967216, %v1869_v45 }
 0x1f0   : > { %v836_v17 = vmax.f32 %v795_v13, 0.0  ;;  %v799_v18 = vadd.f32 %v798_v16, %v1790_v8  ;;  %v921_v0 = vadd.f32 %v878_v11, %v877_v10  ;;  %v879_v20 = vmul.f32 %v1801_v14, %v835_v12 }
 0x1f1   : > { %v800_v19 = vpop.f32.mrf.mxu1  ;;  %v1025_v11 = vsub.s32 %v1022_v60, %v1737_v26  ;;  %v1043_v13 = vadd.s32 4294967208, %v1869_v45 }
 0x1f2   : > { %v880_v21 = vmul.f32 %v1804_v15, %v836_v17  ;;  %v837_v22 = vmax.f32 %v799_v18, 0.0  ;;  %v801_v23 = vadd.f32 %v800_v19, %v1793_v9  ;;  %922 = vadd.xlane.f32.xlu0 %v921_v0  ;;  %v1032_v18 = vsub.s32 %v1029_v1, %v1737_v26 }
 0x1f3   : > { %v804_v24 = vpop.f32.mrf.mxu1 }
 0x1f4   : > { %v838_v27 = vmax.f32 %v801_v23, 0.0  ;;  %v805_v28 = vadd.f32 %v804_v24, %v1790_v8  ;;  %v924_v32 = vadd.f32 %v880_v21, %v879_v20  ;;  %v881_v33 = vmul.f32 %v1801_v14, %v837_v22 }
 0x1f5   : > { %v806_v29 = vpop.f32.mrf.mxu1  ;;  %v1050_v22 = vadd.s32 4294967200, %v1869_v45 }
 0x1f6   : > { %v882_v34 = vmul.f32 %v1804_v15, %v838_v27  ;;  %v839_v35 = vmax.f32 %v805_v28, 0.0  ;;  %v807_v36 = vadd.f32 %v806_v29, %v1793_v9  ;;  %925 = vadd.xlane.f32.xlu1 %v924_v32  ;;  %v1039_v27 = vsub.s32 %v1036_v30, %v1737_v26 }
 0x1f7   : > { %v1057_v28 = vadd.s32 4294967192, %v1869_v45 }
 0x1f8   : > { %v840_v37 = vmax.f32 %v807_v36, 0.0  ;;  %v927_v38 = vadd.f32 %v882_v34, %v881_v33  ;;  %v883_v39 = vmul.f32 %v1801_v14, %v839_v35  ;;  %v987_v14 = vadd.s32 4294967272, %v1869_v45 }
 0x1f9   : > { %v1046_v34 = vsub.s32 %v1043_v13, %v1737_v26  ;;  %v1060_v47 = vsub.s32 %v1057_v28, %v1737_v26 }
 0x1fa   : > { %v884_v40 = vmul.f32 %v1804_v15, %v840_v37  ;;  %928 = vadd.xlane.f32.xlu0 %v927_v38  ;;  %v994_v15 = vadd.s32 4294967264, %v1869_v45  ;;  %v990_v56 = vsub.s32 %v987_v14, %v1737_v26 }
 0x1fc   : > { %v930_v41 = vadd.f32 %v884_v40, %v883_v39  ;;  %v997_v59 = vsub.s32 %v994_v15, %v1737_v26  ;;  %v1064_v40 = vadd.s32 4294967184, %v1869_v45 }
 0x1fe   : > { %931 = vadd.xlane.f32.xlu1 %v930_v41 }
 0x24b   : > { %v887_v8 = vpop.xlane.xlu0 %886 }
 0x24c   : > { %v935_v3 = vadd.f32 %v1875_v50, %v887_v8 }
 0x24e   : > { %v972_v19 = vrot.slane %v935_v3, %v971_v51 }
 0x24f   : > { %v890_v43 = vpop.xlane.xlu0 %889 }
 0x250   : > { %v936_v58 = vadd.f32 %v1875_v50, %v890_v43  ;;  %v1053_v43 = vsub.s32 %v1050_v22, %v1737_v26 }
 0x252   : > { %v977_v31 = vrot.slane %v936_v58, %v976_v53 }
 0x253   : > { %v893_v42 = vpop.xlane.xlu1 %892 }
 0x254   : > { %v937_v62 = vadd.f32 %v1875_v50, %v893_v42  ;;  %v979_v32 = vsel %vm978_vm1, %v977_v31, %v972_v19 }
 0x256   : > { %v984_v16 = vrot.slane %v937_v62, %v983_v54 }
 0x257   : > { %v896_v44 = vpop.xlane.xlu1 %895 }
 0x258   : > { %v938_v4 = vadd.f32 %v1875_v50, %v896_v44  ;;  %v986_v36 = vsel %vm985_vm2, %v984_v16, %v979_v32 }
 0x25a   : > { %v991_v20 = vrot.slane %v938_v4, %v990_v56 }
 0x25b   : > { %v899_v46 = vpop.xlane.xlu0 %898 }
 0x25c   : > { %v939_v6 = vadd.f32 %v1875_v50, %v899_v46  ;;  %v993_v41 = vsel %vm992_vm3, %v991_v20, %v986_v36 }
 0x25e   : > { %v998_v23 = vrot.slane %v939_v6, %v997_v59 }
 0x25f   : > { %v902_v9 = vpop.xlane.xlu1 %901 }
 0x260   : > { %v940_v10 = vadd.f32 %v1875_v50, %v902_v9  ;;  %v1000_v44 = vsel %vm999_vm4, %v998_v23, %v993_v41 }
 0x262   : > { %v1005_v29 = vrot.slane %v940_v10, %v1004_v63 }
 0x263   : > { %v905_v49 = vpop.xlane.xlu0 %904 }
 0x264   : > { %v941_v17 = vadd.f32 %v1875_v50, %v905_v49  ;;  %v1007_v48 = vsel %vm1006_vm5, %v1005_v29, %v1000_v44  ;;  %v1071_v49 = vadd.s32 4294967176, %v1869_v45 }
 0x266   : > { %v1012_v37 = vrot.slane %v941_v17, %v1011_v5  ;;  %v1074_v60 = vsub.s32 %v1071_v49, %v1737_v26 }
 0x267   : > { %v908_v25 = vpop.xlane.xlu1 %907 }
 0x268   : > { %v942_v21 = vadd.f32 %v1875_v50, %v908_v25  ;;  %v1014_v51 = vsel %vm1013_vm6, %v1012_v37, %v1007_v48  ;;  %v1067_v25 = vsub.s32 %v1064_v40, %v1737_v26 }
 0x26a   : > { %v1019_v8 = vrot.slane %v942_v21, %v1018_v7 }
 0x26b   : > { %v911_v61 = vpop.xlane.xlu0 %910 }
 0x26c   : > { %v943_v24 = vadd.f32 %v1875_v50, %v911_v61  ;;  %v1021_v54 = vsel %vm1020_vm7, %v1019_v8, %v1014_v51 }
 0x26e   : > { %v1026_v46 = vrot.slane %v943_v24, %v1025_v11 }
 0x26f   : > { %v914_v2 = vpop.xlane.xlu1 %913 }
 0x270   : > { %v944_v33 = vadd.f32 %v1875_v50, %v914_v2  ;;  %v1028_v57 = vsel %vm1027_vm8, %v1026_v46, %v1021_v54 }
 0x272   : > { %v1033_v14 = vrot.slane %v944_v33, %v1032_v18 }
 0x273   : > { %v917_v12 = vpop.xlane.xlu0 %916 }
 0x274   : > { %v945_v38 = vadd.f32 %v1875_v50, %v917_v12  ;;  %v1035_v45 = vsel %vm1034_vm9, %v1033_v14, %v1028_v57 }
 0x276   : > { %v1040_v52 = vrot.slane %v945_v38, %v1039_v27 }
 0x277   : > { %v920_v0 = vpop.xlane.xlu1 %919 }
 0x278   : > { %v946_v42 = vadd.f32 %v1875_v50, %v920_v0  ;;  %v1042_v61 = vsel %vm1041_vm10, %v1040_v52, %v1035_v45 }
 0x27a   : > { %v1047_v55 = vrot.slane %v946_v42, %v1046_v34 }
 0x27b   : > { %v923_v35 = vpop.xlane.xlu0 %922 }
 0x27c   : > { %v947_v9 = vadd.f32 %v1875_v50, %v923_v35  ;;  %v1049_v1 = vsel %vm1048_vm11, %v1047_v55, %v1042_v61 }
 0x27e   : > { %v1054_v58 = vrot.slane %v947_v9, %v1053_v43 }
 0x27f   : > { %v926_v39 = vpop.xlane.xlu1 %925 }
 0x280   : > { %v948_v15 = vadd.f32 %v1875_v50, %v926_v39  ;;  %v1056_v3 = vsel %vm1055_vm12, %v1054_v58, %v1049_v1 }
 0x282   : > { %v1061_v59 = vrot.slane %v948_v15, %v1060_v47 }
 0x283   : > { %v929_v53 = vpop.xlane.xlu0 %928 }
 0x284   : > { %v949_v56 = vadd.f32 %v1875_v50, %v929_v53  ;;  %v1063_v4 = vsel %vm1062_vm13, %v1061_v59, %v1056_v3 }
 0x286   : > { %v1068_v62 = vrot.slane %v949_v56, %v1067_v25 }
 0x287   : > { %v932_v63 = vpop.xlane.xlu1 %931 }
 0x288   : > { %v950_v2 = vadd.f32 %v1875_v50, %v932_v63  ;;  %v1070_v6 = vsel %vm1069_vm14, %v1068_v62, %v1063_v4 }
 0x28a   : > { %v1075_v5 = vrot.slane %v950_v2, %v1074_v60 }
 0x28c   : > { %v1077_v26 = vsel %vm1076_vm15, %v1075_v5, %v1070_v6 }
 0x28d   : > { %1079 = vst [vmem:[%s287_s21] sm:$0x1] %v1077_v26 }
 0x28e   : > { %1343 = shalt.err (!%p1340_p0)
}
 0x28f   : > { %s1344_s22 = scalar_lea.hbm %s1936_s30, 16  ;;  %s1348_s18 = scalar_lea.hbm %s1980_s7, 32 }
 0x290   : > { %p1345_p1 = scmp.ne.s32.totalorder %s1936_s30, %s1344_s22  ;;  %p1349_p4 = scmp.lt.s32.totalorder %s1936_s30, %s1980_s7 }
 0x291   : > { %p1350_p7 = scmp.lt.s32.totalorder %s1348_s18, %s1344_s22 }
 0x292   : > { %p1346_p2 = pnand %p1345_p1, %p1482_p5 }
 0x293   : > { %p1351_p6 = por %p1350_p7, %p1349_p4 }
 0x294   : > { %p1347_p3 = pneg %p1346_p2 }
 0x296   : > { %p1352_p8 = pnand %p1351_p6, %p1347_p3 }
 0x298   : > { %1355 = shalt.err (!%p1352_p8)
}
 0x299   : > { %1255 = dma.vmem_to_hbm [thread:$0]  (%p1482_p5), %s1094_s24, 16, %s1936_s30, %s1081_s9  }
 0x29a PF: > { %p1267_p9 = scmp.ge.s32.totalorder %s1394_s29, 2  ;;  %s1105_s21 = sand.u32 1, %s1382_s26  }
 0x29b   : > { %p1984_p10 = scmp.ne.s32.totalorder %s1982_s13, 0  ;;  %s1106_s25 = scalar_lea.sflag [#allocation5], %s1105_s21 }
 0x29d   : > { %p1262_p11 = pnand %p1267_p9, %p1984_p10 }
 0x29f   : > { %p1263_p12 = pneg %p1262_p11 }
 0x2a1   : > { %1377 = dma.done.wait (%p1263_p12), %s1106_s25, 16  }
 0x2a2   : > { %1379 = vsyncadd (%p1263_p12), %s1106_s25, 4294967280  ;;  %p19_p13 = scmp.ge.s32.totalorder %s1469_s8, 4   ;;  %s1985_s26 = smov %s1386_s27 }
 0x2a3   : > { %s1986_s27 = smov %s1390_s28  ;;  %s1987_s28 = smov %s1480_s11 }
 0x2a4   : > { %s1988_s29 = smov %s1469_s8  ;;  %21 = sbr.rel (!%p19_p13) target bundleno = 6 (0x6), region = 88 }
 0x2a9   :  { %1110 = vsyncpa [#allocation4], 1 }
 0x2aa   :  { %1112 = vsyncpa [#allocation4 + $0x1], 1 }
 0x2ab   :  { %1113 = vsyncpa [#allocation5], 1 }
 0x2ac   :  { %1115 = vsyncpa [#allocation5 + $0x1], 1 }

</bundles_post_ra>
